<compile_context>
chip_gen: v6e
topology: v6e:2x2x1
jax: 0.10.0
libtpu: 0.0.40
codegen_flags: <defaults>
</compile_context>

<pallas_src>
import functools

import jax
import jax.numpy as jnp
from jax import lax
from jax.experimental import pallas as pl
from jax.experimental.pallas import tpu as pltpu

# Module hyper-parameters (defaults of NeRFSmall.__init__)
INPUT_CH = 3
INPUT_CH_VIEWS = 3
NUM_LAYERS = 3
HIDDEN_DIM = 64
GEO_FEAT_DIM = 15
NUM_LAYERS_COLOR = 4
HIDDEN_DIM_COLOR = 64

IN_DIM = INPUT_CH + INPUT_CH_VIEWS          # 6
SIGMA_OUT = 1 + GEO_FEAT_DIM                # 16
OUT_DIM = 3 + 1                             # color(3) + sigma(1)


def _num_tensorcores_per_chip():
    """2 on v7x (two TensorCores share the grid via 'parallel'), else 1."""
    try:
        kind = jax.devices()[0].device_kind.lower()
    except Exception:  # pragma: no cover - conservative fallback
        return 1
    return 2 if "7" in kind else 1


_NUM_TC = _num_tensorcores_per_chip()


def _nerf_small_kernel(x_ref,
                       w0_ref, ws1_ref, wcomp_ref, wc1_ref, wc2_ref, wc3_ref,
                       out_ref, *, sb):
    """One batch tile of the NeRFSmall MLP.

    x_ref:   (TM, 6)   -> [input_pts(3) | input_views(3)]  (f32)
    out_ref: (TM, 4)   -> [color(3) | sigma(1)]            (f32)
    Weights are bf16; accumulation is f32 (preferred_element_type); all
    elementwise math (relu / add / final store) is f32.
    """
    f32 = jnp.float32
    bf16 = jnp.bfloat16
    n_sub = out_ref.shape[0] // sb

    # Resident bf16 weights (loaded once per grid step, reused by every
    # sub-block of the tile).
    w0 = w0_ref[...]        # (6, 128)  = [Ws0 (views rows 0) | Wc0_views (pts rows 0)]
    ws1 = ws1_ref[...]      # (64, 64)
    wcomp = wcomp_ref[...]  # (64, 128) = [ws2_geo @ wc0_geo | 0,0,0,sigma_col,0...]
    wc1 = wc1_ref[...]      # (64, 64)
    wc2 = wc2_ref[...]      # (64, 64)
    wc3 = wc3_ref[...]      # (64, 4)   last column zero-padded

    def body(i, carry):
        row = pl.multiple_of(i * sb, sb)
        xb = x_ref[pl.ds(row, sb), :].astype(bf16)                     # (sb, 6)

        # Fused: sigma layer 0 (lanes 0:64) and the views contribution to
        # color layer 0 (lanes 64:128), one (sb,6)@(6,128) matmul.
        h01 = jnp.dot(xb, w0, preferred_element_type=f32)              # (sb, 128) f32
        # relu + immediate bf16 cast to keep the live vreg set small.
        h_sig = jnp.maximum(h01[:, :HIDDEN_DIM], 0.0).astype(bf16)     # (sb, 64) bf16
        v_pre = h01[:, HIDDEN_DIM:].astype(bf16)                       # (sb, 64) bf16, no relu

        # ---- sigma net layer 1 ----
        h = jnp.maximum(
            jnp.dot(h_sig, ws1, preferred_element_type=f32), 0.0).astype(bf16)

        # ---- composed sigma layer 2 + color layer 0 (geo half) ----
        # lanes 0:64  = geo_feat @ Wc0_geo   (pre-composed with ws2 in f32)
        # lane  64+3  = sigma (raw, no activation)
        hf = jnp.dot(h, wcomp, preferred_element_type=f32)             # (sb, 128) f32

        # ---- color net ----
        h = jnp.maximum(
            v_pre.astype(f32) + hf[:, :HIDDEN_DIM_COLOR], 0.0).astype(bf16)
        h = jnp.maximum(
            jnp.dot(h, wc1, preferred_element_type=f32), 0.0).astype(bf16)
        h = jnp.maximum(
            jnp.dot(h, wc2, preferred_element_type=f32), 0.0).astype(bf16)
        color4 = jnp.dot(h, wc3, preferred_element_type=f32)           # (sb, 4), col3 == 0

        # Route sigma (lane 67 of hf) into output column 3 with a plain add.
        out = color4 + hf[:, HIDDEN_DIM_COLOR:HIDDEN_DIM_COLOR + OUT_DIM]
        out_ref[pl.ds(row, sb), :] = out.astype(out_ref.dtype)
        return carry

    # Unroll factor: divisor of n_sub, capped at 8 to bound code size.
    unroll = n_sub
    if unroll > 8:
        for u in (8, 4, 2, 1):
            if n_sub % u == 0:
                unroll = u
                break
    lax.fori_loop(0, n_sub, body, 0, unroll=unroll)


def _prep_params(params, dtype=jnp.bfloat16):
    """Repack torch-convention weights (out,in) into kernel matrices (in,out)."""
    ws = [jnp.asarray(w, jnp.float32).T for w in params["sigma_net"]]   # (3,64),(64,64),(64,16)
    wc = [jnp.asarray(w, jnp.float32).T for w in params["color_net"]]   # (18,64),(64,64),(64,64),(64,3)
    f32 = jnp.float32

    # Fused first weight (6, 128): [ [Ws0 ; 0] | [0 ; Wc0_views] ]
    ws0_pad = jnp.concatenate(
        [ws[0], jnp.zeros((INPUT_CH_VIEWS, HIDDEN_DIM), f32)], axis=0)      # (6,64)
    wc0_views = wc[0][:INPUT_CH_VIEWS, :]                                   # (3,64)
    wc0v_pad = jnp.concatenate(
        [jnp.zeros((INPUT_CH, HIDDEN_DIM_COLOR), f32), wc0_views], axis=0)  # (6,64)
    w0 = jnp.concatenate([ws0_pad, wc0v_pad], axis=1)                       # (6,128)

    # Compose sigma layer 2 with the geo-feat half of color layer 0 (in f32):
    #   lanes 0:64  -> ws2_geo @ wc0_geo   (geo contribution to color layer 0)
    #   lane  64+3  -> ws2[:, 0]           (raw sigma column)
    ws2 = ws[2]                                                             # (64,16)
    wc0_geo = wc[0][INPUT_CH_VIEWS:, :]                                     # (15,64)
    w_geo = ws2[:, 1:] @ wc0_geo                                            # (64,64)
    right = jnp.zeros((HIDDEN_DIM, 128 - HIDDEN_DIM_COLOR), f32)
    right = right.at[:, OUT_DIM - 1].set(ws2[:, 0])                         # sigma at lane 67
    wcomp = jnp.concatenate([w_geo, right], axis=1)                         # (64,128)

    # Color layer 3: (64,3) padded with a zero column -> (64,4)
    wc3 = jnp.concatenate([wc[3], jnp.zeros((HIDDEN_DIM_COLOR, 1), f32)], axis=1)

    mats = (w0, ws[1], wcomp, wc[1], wc[2], wc3)
    return tuple(m.astype(dtype) for m in mats)


def _cdiv(a, b):
    return -(-a // b)


def _round_up(a, b):
    return _cdiv(a, b) * b


@functools.partial(jax.jit, static_argnames=("tm", "sb"))
def nerf_small_forward(x, params, *, tm=4096, sb=128):
    """x: (N, 6) float32 -> (N, 4) float32 = [color(3) | sigma(1)]."""
    n = x.shape[0]
    assert x.shape[-1] == IN_DIM

    # Effective batch tile: a multiple of the sub-block size, no over-padding
    # of tiny batches.  The ">= 2 grid tiles" split only pays off where there
    # are 2 TensorCores (v7x); on v5e/v6e it just adds a grid step.
    tm_eff = max(sb, (tm // sb) * sb)
    tm_eff = min(tm_eff, _round_up(n, sb))
    g = _cdiv(n, tm_eff)
    if _NUM_TC >= 2 and g < 2 and n > sb:
        tm_eff = max(sb, _round_up(_cdiv(n, 2), sb))
        g = _cdiv(n, tm_eff)
    n_pad = g * tm_eff

    if n_pad != n:
        x = jnp.concatenate(
            [x, jnp.zeros((n_pad - n, IN_DIM), x.dtype)], axis=0)

    mats = _prep_params(params)

    full_spec = lambda shape: pl.BlockSpec(shape, lambda i: (0, 0))
    in_specs = [pl.BlockSpec((tm_eff, IN_DIM), lambda i: (i, 0))] + \
               [full_spec(m.shape) for m in mats]

    # Advisory cost estimate (per-row matmul flops summed over the 6 dots).
    flops_per_row = 2 * (IN_DIM * 128 + 64 * 64 + 64 * 128 + 64 * 64 + 64 * 64 + 64 * OUT_DIM)
    weight_bytes = sum(int(m.size) * 2 for m in mats)
    cost = pl.CostEstimate(
        flops=flops_per_row * n_pad,
        transcendentals=0,
        bytes_accessed=n_pad * (IN_DIM * 4 + OUT_DIM * 4) + weight_bytes,
    )

    out = pl.pallas_call(
        functools.partial(_nerf_small_kernel, sb=sb),
        out_shape=jax.ShapeDtypeStruct((n_pad, OUT_DIM), jnp.float32),
        grid_spec=pltpu.PrefetchScalarGridSpec(
            num_scalar_prefetch=0,
            grid=(g,),
            in_specs=in_specs,
            out_specs=pl.BlockSpec((tm_eff, OUT_DIM), lambda i: (i, 0)),
        ),
        compiler_params=pltpu.CompilerParams(
            dimension_semantics=("parallel",),
            vmem_limit_bytes=32 * 1024 * 1024),
        cost_estimate=cost,
    )(x, *mats)
    return out[:n]


def _init_params(key):
    """Deterministic synthetic weights with nn.Linear shapes (out, in)."""
    sigma_shapes = []
    for l in range(NUM_LAYERS):
        in_dim = INPUT_CH if l == 0 else HIDDEN_DIM
        out_dim = (1 + GEO_FEAT_DIM) if l == NUM_LAYERS - 1 else HIDDEN_DIM
        sigma_shapes.append((out_dim, in_dim))
    color_shapes = []
    for l in range(NUM_LAYERS_COLOR):
        in_dim = (INPUT_CH_VIEWS + GEO_FEAT_DIM) if l == 0 else HIDDEN_DIM
        out_dim = 3 if l == NUM_LAYERS_COLOR - 1 else HIDDEN_DIM_COLOR
        color_shapes.append((out_dim, in_dim))

    keys = jax.random.split(key, len(sigma_shapes) + len(color_shapes))
    sigma_net = [
        (jax.random.normal(k, s, jnp.float32) * (1.0 / jnp.sqrt(s[1])))
        for k, s in zip(keys[:NUM_LAYERS], sigma_shapes)
    ]
    color_net = [
        (jax.random.normal(k, s, jnp.float32) * (1.0 / jnp.sqrt(s[1])))
        for k, s in zip(keys[NUM_LAYERS:], color_shapes)
    ]
    return {"sigma_net": sigma_net, "color_net": color_net}


def _reference_forward(x, params):
    """Pure-JAX (f32) replica of the PyTorch forward, for verification."""
    pts, views = x[..., :INPUT_CH], x[..., INPUT_CH:]
    h = pts
    for l, w in enumerate(params["sigma_net"]):
        h = h @ w.T
        if l != NUM_LAYERS - 1:
            h = jnp.maximum(h, 0.0)
    sigma, geo = h[..., 0], h[..., 1:]
    h = jnp.concatenate([views, geo], axis=-1)
    for l, w in enumerate(params["color_net"]):
        h = h @ w.T
        if l != NUM_LAYERS_COLOR - 1:
            h = jnp.maximum(h, 0.0)
    return jnp.concatenate([h, sigma[..., None]], axis=-1)


if __name__ == "__main__":
    key = jax.random.PRNGKey(0)
    k_param, k_x = jax.random.split(key)

    params = _init_params(k_param)
    n = 384  # deliberately NOT a multiple of the tile size (exercises padding)
    x = jax.random.normal(k_x, (n, IN_DIM), jnp.float32)

    out = nerf_small_forward(x, params, tm=4096, sb=128)
    out = jax.block_until_ready(out)

    ref = _reference_forward(x, params)
    assert out.shape == (n, OUT_DIM)
    # bf16 MXU operands (f32 accumulation) -> relaxed tolerance vs f32 reference
    err = float(jnp.max(jnp.abs(out - ref)) / (jnp.max(jnp.abs(ref)) + 1e-6))
    assert err < 5e-2, f"mismatch vs reference: rel-to-scale err {err}"

    print("KERNEL_OK")
</pallas_src>

<mosaic_0001>
module attributes {stable_mosaic.version = 11 : i64} {
  func.func @_nerf_small_kernel(%arg0: i32, %arg1: memref<384x6xf32, #tpu.memory_space<vmem>>, %arg2: memref<6x128xbf16, #tpu.memory_space<vmem>>, %arg3: memref<64x64xbf16, #tpu.memory_space<vmem>>, %arg4: memref<64x128xbf16, #tpu.memory_space<vmem>>, %arg5: memref<64x64xbf16, #tpu.memory_space<vmem>>, %arg6: memref<64x64xbf16, #tpu.memory_space<vmem>>, %arg7: memref<64x4xbf16, #tpu.memory_space<vmem>>, %arg8: memref<384x4xf32, #tpu.memory_space<vmem>>) attributes {dimension_semantics = [#tpu.dimension_semantics<parallel>], iteration_bounds = array<i64: 1>, scalar_prefetch = 0 : i64, scratch_operands = 0 : i64, tpu.core_type = #tpu.core_type<tc>, window_params = [{transform_indices = @transform_0, window_bounds = array<i64: 384, 6>}, {pipeline_mode = #tpu.pipeline_mode<synchronous>, transform_indices = @transform_1, window_bounds = array<i64: 6, 128>}, {pipeline_mode = #tpu.pipeline_mode<synchronous>, transform_indices = @transform_2, window_bounds = array<i64: 64, 64>}, {pipeline_mode = #tpu.pipeline_mode<synchronous>, transform_indices = @transform_3, window_bounds = array<i64: 64, 128>}, {pipeline_mode = #tpu.pipeline_mode<synchronous>, transform_indices = @transform_4, window_bounds = array<i64: 64, 64>}, {pipeline_mode = #tpu.pipeline_mode<synchronous>, transform_indices = @transform_5, window_bounds = array<i64: 64, 64>}, {pipeline_mode = #tpu.pipeline_mode<synchronous>, transform_indices = @transform_6, window_bounds = array<i64: 64, 4>}, {transform_indices = @transform_7, window_bounds = array<i64: 384, 4>}]} {
    %c0 = arith.constant 0 : index
    %c0_0 = arith.constant 0 : index
    %0 = vector.load %arg2[%c0, %c0_0] : memref<6x128xbf16, #tpu.memory_space<vmem>>, vector<6x128xbf16>
    %c0_1 = arith.constant 0 : index
    %c0_2 = arith.constant 0 : index
    %1 = vector.load %arg3[%c0_1, %c0_2] : memref<64x64xbf16, #tpu.memory_space<vmem>>, vector<64x64xbf16>
    %c0_3 = arith.constant 0 : index
    %c0_4 = arith.constant 0 : index
    %2 = vector.load %arg4[%c0_3, %c0_4] : memref<64x128xbf16, #tpu.memory_space<vmem>>, vector<64x128xbf16>
    %c0_5 = arith.constant 0 : index
    %c0_6 = arith.constant 0 : index
    %3 = vector.load %arg5[%c0_5, %c0_6] : memref<64x64xbf16, #tpu.memory_space<vmem>>, vector<64x64xbf16>
    %c0_7 = arith.constant 0 : index
    %c0_8 = arith.constant 0 : index
    %4 = vector.load %arg6[%c0_7, %c0_8] : memref<64x64xbf16, #tpu.memory_space<vmem>>, vector<64x64xbf16>
    %c0_9 = arith.constant 0 : index
    %c0_10 = arith.constant 0 : index
    %5 = vector.load %arg7[%c0_9, %c0_10] : memref<64x4xbf16, #tpu.memory_space<vmem>>, vector<64x4xbf16>
    %c0_i32 = arith.constant 0 : i32
    %c128_i32 = arith.constant 128 : i32
    %6 = arith.muli %c0_i32, %c128_i32 : i32
    %7 = tpu.assume_multiple %6, 128 : i32
    %8 = arith.index_cast %7 : i32 to index
    %c0_11 = arith.constant 0 : index
    %9 = vector.load %arg1[%8, %c0_11] : memref<384x6xf32, #tpu.memory_space<vmem>>, vector<128x6xf32>
    %10 = arith.truncf %9 : vector<128x6xf32> to vector<128x6xbf16>
    %cst = arith.constant dense<0.000000e+00> : vector<128x128xf32>
    %11 = tpu.matmul %10, %0, %cst {dimension_numbers = #tpu.dot_dimension_numbers<[1], [0], [0], [1], [0, 0, 1, 1], [], []>} : vector<128x6xbf16>, vector<6x128xbf16>, vector<128x128xf32> -> vector<128x128xf32>
    %12 = vector.extract_strided_slice %11 {offsets = [0, 0], sizes = [128, 64], strides = [1, 1]} : vector<128x128xf32> to vector<128x64xf32>
    %cst_12 = arith.constant 0.000000e+00 : f32
    %13 = vector.broadcast %cst_12 : f32 to vector<128x64xf32>
    %14 = arith.maximumf %12, %13 : vector<128x64xf32>
    %15 = arith.truncf %14 : vector<128x64xf32> to vector<128x64xbf16>
    %16 = vector.extract_strided_slice %11 {offsets = [0, 64], sizes = [128, 64], strides = [1, 1]} : vector<128x128xf32> to vector<128x64xf32>
    %17 = arith.truncf %16 : vector<128x64xf32> to vector<128x64xbf16>
    %cst_13 = arith.constant dense<0.000000e+00> : vector<128x64xf32>
    %18 = tpu.matmul %15, %1, %cst_13 {dimension_numbers = #tpu.dot_dimension_numbers<[1], [0], [0], [1], [0, 0, 1, 1], [], []>} : vector<128x64xbf16>, vector<64x64xbf16>, vector<128x64xf32> -> vector<128x64xf32>
    %cst_14 = arith.constant 0.000000e+00 : f32
    %19 = vector.broadcast %cst_14 : f32 to vector<128x64xf32>
    %20 = arith.maximumf %18, %19 : vector<128x64xf32>
    %21 = arith.truncf %20 : vector<128x64xf32> to vector<128x64xbf16>
    %cst_15 = arith.constant dense<0.000000e+00> : vector<128x128xf32>
    %22 = tpu.matmul %21, %2, %cst_15 {dimension_numbers = #tpu.dot_dimension_numbers<[1], [0], [0], [1], [0, 0, 1, 1], [], []>} : vector<128x64xbf16>, vector<64x128xbf16>, vector<128x128xf32> -> vector<128x128xf32>
    %23 = arith.extf %17 : vector<128x64xbf16> to vector<128x64xf32>
    %24 = vector.extract_strided_slice %22 {offsets = [0, 0], sizes = [128, 64], strides = [1, 1]} : vector<128x128xf32> to vector<128x64xf32>
    %25 = arith.addf %23, %24 : vector<128x64xf32>
    %cst_16 = arith.constant 0.000000e+00 : f32
    %26 = vector.broadcast %cst_16 : f32 to vector<128x64xf32>
    %27 = arith.maximumf %25, %26 : vector<128x64xf32>
    %28 = arith.truncf %27 : vector<128x64xf32> to vector<128x64xbf16>
    %cst_17 = arith.constant dense<0.000000e+00> : vector<128x64xf32>
    %29 = tpu.matmul %28, %3, %cst_17 {dimension_numbers = #tpu.dot_dimension_numbers<[1], [0], [0], [1], [0, 0, 1, 1], [], []>} : vector<128x64xbf16>, vector<64x64xbf16>, vector<128x64xf32> -> vector<128x64xf32>
    %cst_18 = arith.constant 0.000000e+00 : f32
    %30 = vector.broadcast %cst_18 : f32 to vector<128x64xf32>
    %31 = arith.maximumf %29, %30 : vector<128x64xf32>
    %32 = arith.truncf %31 : vector<128x64xf32> to vector<128x64xbf16>
    %cst_19 = arith.constant dense<0.000000e+00> : vector<128x64xf32>
    %33 = tpu.matmul %32, %4, %cst_19 {dimension_numbers = #tpu.dot_dimension_numbers<[1], [0], [0], [1], [0, 0, 1, 1], [], []>} : vector<128x64xbf16>, vector<64x64xbf16>, vector<128x64xf32> -> vector<128x64xf32>
    %cst_20 = arith.constant 0.000000e+00 : f32
    %34 = vector.broadcast %cst_20 : f32 to vector<128x64xf32>
    %35 = arith.maximumf %33, %34 : vector<128x64xf32>
    %36 = arith.truncf %35 : vector<128x64xf32> to vector<128x64xbf16>
    %cst_21 = arith.constant dense<0.000000e+00> : vector<128x4xf32>
    %37 = tpu.matmul %36, %5, %cst_21 {dimension_numbers = #tpu.dot_dimension_numbers<[1], [0], [0], [1], [0, 0, 1, 1], [], []>} : vector<128x64xbf16>, vector<64x4xbf16>, vector<128x4xf32> -> vector<128x4xf32>
    %38 = vector.extract_strided_slice %22 {offsets = [0, 64], sizes = [128, 4], strides = [1, 1]} : vector<128x128xf32> to vector<128x4xf32>
    %39 = arith.addf %37, %38 : vector<128x4xf32>
    %40 = arith.index_cast %7 : i32 to index
    %c0_22 = arith.constant 0 : index
    %41 = vector.load %arg8[%40, %c0_22] : memref<384x4xf32, #tpu.memory_space<vmem>>, vector<128x4xf32>
    tpu.vector_store %arg8[%40, %c0_22], %39 {strides = array<i32>} : memref<384x4xf32, #tpu.memory_space<vmem>>, vector<128x4xf32>,
    %c1_i32 = arith.constant 1 : i32
    %c128_i32_23 = arith.constant 128 : i32
    %42 = arith.muli %c1_i32, %c128_i32_23 : i32
    %43 = tpu.assume_multiple %42, 128 : i32
    %44 = arith.index_cast %43 : i32 to index
    %c0_24 = arith.constant 0 : index
    %45 = vector.load %arg1[%44, %c0_24] : memref<384x6xf32, #tpu.memory_space<vmem>>, vector<128x6xf32>
    %46 = arith.truncf %45 : vector<128x6xf32> to vector<128x6xbf16>
    %cst_25 = arith.constant dense<0.000000e+00> : vector<128x128xf32>
    %47 = tpu.matmul %46, %0, %cst_25 {dimension_numbers = #tpu.dot_dimension_numbers<[1], [0], [0], [1], [0, 0, 1, 1], [], []>} : vector<128x6xbf16>, vector<6x128xbf16>, vector<128x128xf32> -> vector<128x128xf32>
    %48 = vector.extract_strided_slice %47 {offsets = [0, 0], sizes = [128, 64], strides = [1, 1]} : vector<128x128xf32> to vector<128x64xf32>
    %cst_26 = arith.constant 0.000000e+00 : f32
    %49 = vector.broadcast %cst_26 : f32 to vector<128x64xf32>
    %50 = arith.maximumf %48, %49 : vector<128x64xf32>
    %51 = arith.truncf %50 : vector<128x64xf32> to vector<128x64xbf16>
    %52 = vector.extract_strided_slice %47 {offsets = [0, 64], sizes = [128, 64], strides = [1, 1]} : vector<128x128xf32> to vector<128x64xf32>
    %53 = arith.truncf %52 : vector<128x64xf32> to vector<128x64xbf16>
    %cst_27 = arith.constant dense<0.000000e+00> : vector<128x64xf32>
    %54 = tpu.matmul %51, %1, %cst_27 {dimension_numbers = #tpu.dot_dimension_numbers<[1], [0], [0], [1], [0, 0, 1, 1], [], []>} : vector<128x64xbf16>, vector<64x64xbf16>, vector<128x64xf32> -> vector<128x64xf32>
    %cst_28 = arith.constant 0.000000e+00 : f32
    %55 = vector.broadcast %cst_28 : f32 to vector<128x64xf32>
    %56 = arith.maximumf %54, %55 : vector<128x64xf32>
    %57 = arith.truncf %56 : vector<128x64xf32> to vector<128x64xbf16>
    %cst_29 = arith.constant dense<0.000000e+00> : vector<128x128xf32>
    %58 = tpu.matmul %57, %2, %cst_29 {dimension_numbers = #tpu.dot_dimension_numbers<[1], [0], [0], [1], [0, 0, 1, 1], [], []>} : vector<128x64xbf16>, vector<64x128xbf16>, vector<128x128xf32> -> vector<128x128xf32>
    %59 = arith.extf %53 : vector<128x64xbf16> to vector<128x64xf32>
    %60 = vector.extract_strided_slice %58 {offsets = [0, 0], sizes = [128, 64], strides = [1, 1]} : vector<128x128xf32> to vector<128x64xf32>
    %61 = arith.addf %59, %60 : vector<128x64xf32>
    %cst_30 = arith.constant 0.000000e+00 : f32
    %62 = vector.broadcast %cst_30 : f32 to vector<128x64xf32>
    %63 = arith.maximumf %61, %62 : vector<128x64xf32>
    %64 = arith.truncf %63 : vector<128x64xf32> to vector<128x64xbf16>
    %cst_31 = arith.constant dense<0.000000e+00> : vector<128x64xf32>
    %65 = tpu.matmul %64, %3, %cst_31 {dimension_numbers = #tpu.dot_dimension_numbers<[1], [0], [0], [1], [0, 0, 1, 1], [], []>} : vector<128x64xbf16>, vector<64x64xbf16>, vector<128x64xf32> -> vector<128x64xf32>
    %cst_32 = arith.constant 0.000000e+00 : f32
    %66 = vector.broadcast %cst_32 : f32 to vector<128x64xf32>
    %67 = arith.maximumf %65, %66 : vector<128x64xf32>
    %68 = arith.truncf %67 : vector<128x64xf32> to vector<128x64xbf16>
    %cst_33 = arith.constant dense<0.000000e+00> : vector<128x64xf32>
    %69 = tpu.matmul %68, %4, %cst_33 {dimension_numbers = #tpu.dot_dimension_numbers<[1], [0], [0], [1], [0, 0, 1, 1], [], []>} : vector<128x64xbf16>, vector<64x64xbf16>, vector<128x64xf32> -> vector<128x64xf32>
    %cst_34 = arith.constant 0.000000e+00 : f32
    %70 = vector.broadcast %cst_34 : f32 to vector<128x64xf32>
    %71 = arith.maximumf %69, %70 : vector<128x64xf32>
    %72 = arith.truncf %71 : vector<128x64xf32> to vector<128x64xbf16>
    %cst_35 = arith.constant dense<0.000000e+00> : vector<128x4xf32>
    %73 = tpu.matmul %72, %5, %cst_35 {dimension_numbers = #tpu.dot_dimension_numbers<[1], [0], [0], [1], [0, 0, 1, 1], [], []>} : vector<128x64xbf16>, vector<64x4xbf16>, vector<128x4xf32> -> vector<128x4xf32>
    %74 = vector.extract_strided_slice %58 {offsets = [0, 64], sizes = [128, 4], strides = [1, 1]} : vector<128x128xf32> to vector<128x4xf32>
    %75 = arith.addf %73, %74 : vector<128x4xf32>
    %76 = arith.index_cast %43 : i32 to index
    %c0_36 = arith.constant 0 : index
    %77 = vector.load %arg8[%76, %c0_36] : memref<384x4xf32, #tpu.memory_space<vmem>>, vector<128x4xf32>
    tpu.vector_store %arg8[%76, %c0_36], %75 {strides = array<i32>} : memref<384x4xf32, #tpu.memory_space<vmem>>, vector<128x4xf32>,
    %c2_i32 = arith.constant 2 : i32
    %c128_i32_37 = arith.constant 128 : i32
    %78 = arith.muli %c2_i32, %c128_i32_37 : i32
    %79 = tpu.assume_multiple %78, 128 : i32
    %80 = arith.index_cast %79 : i32 to index
    %c0_38 = arith.constant 0 : index
    %81 = vector.load %arg1[%80, %c0_38] : memref<384x6xf32, #tpu.memory_space<vmem>>, vector<128x6xf32>
    %82 = arith.truncf %81 : vector<128x6xf32> to vector<128x6xbf16>
    %cst_39 = arith.constant dense<0.000000e+00> : vector<128x128xf32>
    %83 = tpu.matmul %82, %0, %cst_39 {dimension_numbers = #tpu.dot_dimension_numbers<[1], [0], [0], [1], [0, 0, 1, 1], [], []>} : vector<128x6xbf16>, vector<6x128xbf16>, vector<128x128xf32> -> vector<128x128xf32>
    %84 = vector.extract_strided_slice %83 {offsets = [0, 0], sizes = [128, 64], strides = [1, 1]} : vector<128x128xf32> to vector<128x64xf32>
    %cst_40 = arith.constant 0.000000e+00 : f32
    %85 = vector.broadcast %cst_40 : f32 to vector<128x64xf32>
    %86 = arith.maximumf %84, %85 : vector<128x64xf32>
    %87 = arith.truncf %86 : vector<128x64xf32> to vector<128x64xbf16>
    %88 = vector.extract_strided_slice %83 {offsets = [0, 64], sizes = [128, 64], strides = [1, 1]} : vector<128x128xf32> to vector<128x64xf32>
    %89 = arith.truncf %88 : vector<128x64xf32> to vector<128x64xbf16>
    %cst_41 = arith.constant dense<0.000000e+00> : vector<128x64xf32>
    %90 = tpu.matmul %87, %1, %cst_41 {dimension_numbers = #tpu.dot_dimension_numbers<[1], [0], [0], [1], [0, 0, 1, 1], [], []>} : vector<128x64xbf16>, vector<64x64xbf16>, vector<128x64xf32> -> vector<128x64xf32>
    %cst_42 = arith.constant 0.000000e+00 : f32
    %91 = vector.broadcast %cst_42 : f32 to vector<128x64xf32>
    %92 = arith.maximumf %90, %91 : vector<128x64xf32>
    %93 = arith.truncf %92 : vector<128x64xf32> to vector<128x64xbf16>
    %cst_43 = arith.constant dense<0.000000e+00> : vector<128x128xf32>
    %94 = tpu.matmul %93, %2, %cst_43 {dimension_numbers = #tpu.dot_dimension_numbers<[1], [0], [0], [1], [0, 0, 1, 1], [], []>} : vector<128x64xbf16>, vector<64x128xbf16>, vector<128x128xf32> -> vector<128x128xf32>
    %95 = arith.extf %89 : vector<128x64xbf16> to vector<128x64xf32>
    %96 = vector.extract_strided_slice %94 {offsets = [0, 0], sizes = [128, 64], strides = [1, 1]} : vector<128x128xf32> to vector<128x64xf32>
    %97 = arith.addf %95, %96 : vector<128x64xf32>
    %cst_44 = arith.constant 0.000000e+00 : f32
    %98 = vector.broadcast %cst_44 : f32 to vector<128x64xf32>
    %99 = arith.maximumf %97, %98 : vector<128x64xf32>
    %100 = arith.truncf %99 : vector<128x64xf32> to vector<128x64xbf16>
    %cst_45 = arith.constant dense<0.000000e+00> : vector<128x64xf32>
    %101 = tpu.matmul %100, %3, %cst_45 {dimension_numbers = #tpu.dot_dimension_numbers<[1], [0], [0], [1], [0, 0, 1, 1], [], []>} : vector<128x64xbf16>, vector<64x64xbf16>, vector<128x64xf32> -> vector<128x64xf32>
    %cst_46 = arith.constant 0.000000e+00 : f32
    %102 = vector.broadcast %cst_46 : f32 to vector<128x64xf32>
    %103 = arith.maximumf %101, %102 : vector<128x64xf32>
    %104 = arith.truncf %103 : vector<128x64xf32> to vector<128x64xbf16>
    %cst_47 = arith.constant dense<0.000000e+00> : vector<128x64xf32>
    %105 = tpu.matmul %104, %4, %cst_47 {dimension_numbers = #tpu.dot_dimension_numbers<[1], [0], [0], [1], [0, 0, 1, 1], [], []>} : vector<128x64xbf16>, vector<64x64xbf16>, vector<128x64xf32> -> vector<128x64xf32>
    %cst_48 = arith.constant 0.000000e+00 : f32
    %106 = vector.broadcast %cst_48 : f32 to vector<128x64xf32>
    %107 = arith.maximumf %105, %106 : vector<128x64xf32>
    %108 = arith.truncf %107 : vector<128x64xf32> to vector<128x64xbf16>
    %cst_49 = arith.constant dense<0.000000e+00> : vector<128x4xf32>
    %109 = tpu.matmul %108, %5, %cst_49 {dimension_numbers = #tpu.dot_dimension_numbers<[1], [0], [0], [1], [0, 0, 1, 1], [], []>} : vector<128x64xbf16>, vector<64x4xbf16>, vector<128x4xf32> -> vector<128x4xf32>
    %110 = vector.extract_strided_slice %94 {offsets = [0, 64], sizes = [128, 4], strides = [1, 1]} : vector<128x128xf32> to vector<128x4xf32>
    %111 = arith.addf %109, %110 : vector<128x4xf32>
    %112 = arith.index_cast %79 : i32 to index
    %c0_50 = arith.constant 0 : index
    %113 = vector.load %arg8[%112, %c0_50] : memref<384x4xf32, #tpu.memory_space<vmem>>, vector<128x4xf32>
    tpu.vector_store %arg8[%112, %c0_50], %111 {strides = array<i32>} : memref<384x4xf32, #tpu.memory_space<vmem>>, vector<128x4xf32>,
    %c3_i32 = arith.constant 3 : i32
    return
  }
  func.func @transform_0(%arg0: i32) -> (i32, i32) {
    %c0_i32 = arith.constant 0 : i32
    %c0_i32_0 = arith.constant 0 : i32
    return %arg0, %c0_i32 : i32, i32
  }
  func.func @transform_1(%arg0: i32) -> (i32, i32) {
    %c0_i32 = arith.constant 0 : i32
    %c0_i32_0 = arith.constant 0 : i32
    %c0_i32_1 = arith.constant 0 : i32
    return %c0_i32, %c0_i32_0 : i32, i32
  }
  func.func @transform_2(%arg0: i32) -> (i32, i32) {
    %c0_i32 = arith.constant 0 : i32
    %c0_i32_0 = arith.constant 0 : i32
    %c0_i32_1 = arith.constant 0 : i32
    return %c0_i32, %c0_i32_0 : i32, i32
  }
  func.func @transform_3(%arg0: i32) -> (i32, i32) {
    %c0_i32 = arith.constant 0 : i32
    %c0_i32_0 = arith.constant 0 : i32
    %c0_i32_1 = arith.constant 0 : i32
    return %c0_i32, %c0_i32_0 : i32, i32
  }
  func.func @transform_4(%arg0: i32) -> (i32, i32) {
    %c0_i32 = arith.constant 0 : i32
    %c0_i32_0 = arith.constant 0 : i32
    %c0_i32_1 = arith.constant 0 : i32
    return %c0_i32, %c0_i32_0 : i32, i32
  }
  func.func @transform_5(%arg0: i32) -> (i32, i32) {
    %c0_i32 = arith.constant 0 : i32
    %c0_i32_0 = arith.constant 0 : i32
    %c0_i32_1 = arith.constant 0 : i32
    return %c0_i32, %c0_i32_0 : i32, i32
  }
  func.func @transform_6(%arg0: i32) -> (i32, i32) {
    %c0_i32 = arith.constant 0 : i32
    %c0_i32_0 = arith.constant 0 : i32
    %c0_i32_1 = arith.constant 0 : i32
    return %c0_i32, %c0_i32_0 : i32, i32
  }
  func.func @transform_7(%arg0: i32) -> (i32, i32) {
    %c0_i32 = arith.constant 0 : i32
    %c0_i32_0 = arith.constant 0 : i32
    return %arg0, %c0_i32 : i32, i32
  }
}

</mosaic_0001>

<bundles_post_ra>
// kernel: nerf_small_forward.1
= control target key start
LH: loop header
LB: loop body
LE: loop exit
PB: predicated region body
PF: predicated region fallthrough
CT: control target
= control target key end

     0   :  { %vm117_vm0 = vcmask 1042432   ;;  %vm92_vm1 = vcmask 48128   ;;  %vm274_vm2 = vcmask 523264   ;;  %s4139_s28 = smov 64   ;;  %vm1192_vm3 = vcmask 31744   ;;  %s5316_s1 = inlined_call_operand.vmem [shape: bf16[6,128], index: 1, kind: input, shape index: {}]   ;;  %s5317_s0 = inlined_call_operand.vmem [shape: f32[384,6], index: 0, kind: input, shape index: {}]   ;;  %s5318_s2 = inlined_call_operand.vmem [shape: bf16[64,64], index: 2, kind: input, shape index: {}]   ;;  %s5319_s3 = inlined_call_operand.vmem [shape: bf16[64,128], index: 3, kind: input, shape index: {}]   ;;  %s5320_s4 = inlined_call_operand.vmem [shape: bf16[64,64], index: 4, kind: input, shape index: {}]   ;;  %s5321_s5 = inlined_call_operand.vmem [shape: bf16[64,64], index: 5, kind: input, shape index: {}]   ;;  %s5322_s6 = inlined_call_operand.vmem [shape: bf16[64,4], index: 6, kind: input, shape index: {}]   ;;  %s5323_s7 = inlined_call_operand.vmem [shape: f32[384,4], index: 7, kind: output, shape index: {}]  }
   0x1   :  { %v4183_v0 = vld [vmem:[%s5316_s1] sm:$0x7]  ;;  %v69_v2 = vld [vmem:[%s5317_s0 + $0x8] sm:$0xff]  ;;  %v70_v5 = vld [vmem:[%s5317_s0 + $0x10] sm:$0xff] }
   0x2   :  { %v68_v1 = vld [vmem:[%s5317_s0] sm:$0xff]  ;;  %4094 = vmatprep.subr.msk.bf16.mxu0 %vm117_vm0, %v4183_v0  ;;  %v4195_v3 = vsel %vm117_vm0, %v4183_v0, 0  ;;  %v71_v6 = vld [vmem:[%s5317_s0 + $0x18] sm:$0xff]  ;;  %v73_v9 = vld [vmem:[%s5317_s0 + $0x28] sm:$0xff] }
   0x3   :  { %v84_v4 = vpack.c.bf16 %v69_v2, %v68_v1  ;;  %v72_v7 = vld [vmem:[%s5317_s0 + $0x20] sm:$0xff]  ;;  %3681 = vmatpush3.bf16.msra.mxu0 %v4195_v3  ;;  %v85_v8 = vpack.c.bf16 %v71_v6, %v70_v5  ;;  %v74_v11 = vld [vmem:[%s5317_s0 + $0x30] sm:$0xff]  ;;  %v75_v12 = vld [vmem:[%s5317_s0 + $0x38] sm:$0xff] }
   0x4   :  { %v86_v10 = vpack.c.bf16 %v73_v9, %v72_v7  ;;  %v76_v13 = vld [vmem:[%s5317_s0 + $0x40] sm:$0xff]  ;;  %v77_v14 = vld [vmem:[%s5317_s0 + $0x48] sm:$0xff]  ;;  %v4228_v15 = vld [vmem:[%s5318_s2 + $0x18] sm:$0xff]   ;;  %v87_v16 = vpack.c.bf16 %v75_v12, %v74_v11 }
   0x5   :  { %3682 = vmatprep.mubr.msk.bf16.mxu0 %vm92_vm1, %v84_v4  ;;  %3698 = vmatprep.subr.bf16.mxu1 %v4228_v15  ;;  %v88_v17 = vpack.c.bf16 %v77_v14, %v76_v13  ;;  %v78_v18 = vld [vmem:[%s5317_s0 + $0x50] sm:$0xff]  ;;  %v79_v19 = vld [vmem:[%s5317_s0 + $0x58] sm:$0xff]  ;;  %v80_v20 = vld [vmem:[%s5317_s0 + $0x60] sm:$0xff] }
   0x6   :  { %3683 = vmatmul.mubr.msk.bf16.vlgmr.msra.gmra.mxu0 %vm92_vm1, %v85_v8  ;;  %3699 = vmatpush3.bf16.msra.mxu1 %v4228_v15  ;;  %v81_v21 = vld [vmem:[%s5317_s0 + $0x68] sm:$0xff]  ;;  %v89_v22 = vpack.c.bf16 %v79_v19, %v78_v18  ;;  %v82_v24 = vld [vmem:[%s5317_s0 + $0x70] sm:$0xff]  ;;  %v83_v25 = vld [vmem:[%s5317_s0 + $0x78] sm:$0xff] }
   0x7   :  { %3686 = vmatprep.mubr.msk.bf16.mxu0 %vm92_vm1, %v86_v10  ;;  %v90_v23 = vpack.c.bf16 %v81_v21, %v80_v20  ;;  %v91_v26 = vpack.c.bf16 %v83_v25, %v82_v24  ;;  %v4258_v27 = vld [vmem:[%s5318_s2 + $0x10] sm:$0xff]   ;;  %v4265_v28 = vld [vmem:[%s5318_s2 + $0x8] sm:$0xff]   ;;  %v4272_v29 = vld [vmem:[%s5318_s2] sm:$0xff]  }
   0x8   :  { %3700 = vmatprep.subr.bf16.mxu1 %v4258_v27  ;;  %v4279_v30 = vld [vmem:[%s5319_s3 + $0x18] sm:$0xff]   ;;  %v4284_v31 = vld [vmem:[%s5319_s3 + $0x10] sm:$0xff]   ;;  %v4292_v32 = vld [vmem:[%s5319_s3 + $0x8] sm:$0xff]  }
   0x9   :  { %3722 = vmatprep.subr.bf16.mxu0 %v4279_v30 }
   0xa   :  { %3701 = vmatpush3.bf16.msra.mxu1 %v4258_v27  ;;  %3723 = vmatpush3.bf16.msra.mxu0 %v4279_v30 }
   0xb   :  { %3702 = vmatprep.subr.bf16.mxu1 %v4265_v28  ;;  %3724 = vmatprep.subr.bf16.mxu0 %v4284_v31 }
   0xe   :  { %3687 = vmatmul.mubr.msk.bf16.gmra.mxu0 %vm92_vm1, %v87_v16  ;;  %3703 = vmatpush3.bf16.msra.mxu1 %v4265_v28  ;;  %v4340_v16 = vld [vmem:[%s5319_s3] sm:$0xff]  }
   0xf   :  { %3690 = vmatprep.mubr.msk.bf16.mxu0 %vm92_vm1, %v88_v17  ;;  %3704 = vmatprep.subr.bf16.mxu1 %v4272_v29 }
  0x10   :  { %3725 = vmatpush3.bf16.msra.mxu0 %v4284_v31 }
  0x11   :  { %3726 = vmatprep.subr.bf16.mxu0 %v4292_v32 }
  0x12   :  { %3705 = vmatpush3.bf16.msra.mxu1 %v4272_v29 }
  0x14   :  { %3727 = vmatpush3.bf16.msra.mxu0 %v4292_v32 }
  0x15   :  { %3728 = vmatprep.subr.bf16.mxu0 %v4340_v16 }
  0x16   :  { %3691 = vmatmul.mubr.msk.bf16.gmra.mxu0 %vm92_vm1, %v89_v22 }
  0x17   :  { %3694 = vmatprep.mubr.msk.bf16.mxu0 %vm92_vm1, %v90_v23 }
  0x18   :  { %3729 = vmatpush3.bf16.msra.mxu0 %v4340_v16 }
  0x1e   :  { %3695 = vmatmul.mubr.msk.bf16.gmra.mxu0 %vm92_vm1, %v91_v26 }
  0xc6   :  { %v3684_v33 = vpop.f32.mrf.mxu0 }
  0xc7   :  { %v220_v41 = vmax.f32 %v3684_v33, 0.0 }
  0xc8   :  { %v4297_v34 = vpop.f32.mrf.mxu0 }
  0xc9   :  { %v218_v39 = vmax.f32 %v4297_v34, 0.0 }
  0xca   :  { %v3685_v35 = vpop.f32.mrf.mxu0 }
  0xcb   :  { %v4299_v36 = vpack.c.bf16 %v3685_v35, %v3684_v33  ;;  %v221_v37 = vmax.f32 %v3685_v35, 0.0 }
  0xcc   :  { %v4301_v38 = vpop.f32.mrf.mxu0 }
  0xcd   :  { %v219_v40 = vmax.f32 %v4301_v38, 0.0  ;;  %v235_v44 = vpack.c.bf16 %v221_v37, %v220_v41 }
  0xce   :  { %v3688_v42 = vpop.f32.mrf.mxu0 }
  0xcf   :  { %v234_v43 = vpack.c.bf16 %v219_v40, %v218_v39  ;;  %v224_v52 = vmax.f32 %v3688_v42, 0.0 }
  0xd0   :  { %v4305_v45 = vpop.f32.mrf.mxu0 }
  0xd1   :  { %3706 = vmatprep.mubr.msk.bf16.mxu1 %vm274_vm2, %v234_v43  ;;  %v222_v50 = vmax.f32 %v4305_v45, 0.0 }
  0xd2   :  { %v3689_v46 = vpop.f32.mrf.mxu0  ;;  %3707 = vmatmul.mubr.msk.bf16.vlgmr.msra.gmra.mxu1 %vm274_vm2, %v235_v44 }
  0xd3   :  { %v4309_v47 = vpack.c.bf16 %v3689_v46, %v3688_v42  ;;  %v225_v48 = vmax.f32 %v3689_v46, 0.0 }
  0xd4   :  { %v4311_v49 = vpop.f32.mrf.mxu0 }
  0xd5   :  { %v223_v51 = vmax.f32 %v4311_v49, 0.0  ;;  %v237_v55 = vpack.c.bf16 %v225_v48, %v224_v52 }
  0xd6   :  { %v3692_v53 = vpop.f32.mrf.mxu0 }
  0xd7   :  { %v236_v54 = vpack.c.bf16 %v223_v51, %v222_v50  ;;  %v228_v63 = vmax.f32 %v3692_v53, 0.0 }
  0xd8   :  { %v4315_v56 = vpop.f32.mrf.mxu0 }
  0xd9   :  { %3710 = vmatprep.mubr.msk.bf16.mxu1 %vm274_vm2, %v236_v54  ;;  %v226_v61 = vmax.f32 %v4315_v56, 0.0 }
  0xda   :  { %v3693_v57 = vpop.f32.mrf.mxu0  ;;  %3711 = vmatmul.mubr.msk.bf16.gmra.mxu1 %vm274_vm2, %v237_v55 }
  0xdb   :  { %v4319_v58 = vpack.c.bf16 %v3693_v57, %v3692_v53  ;;  %v229_v59 = vmax.f32 %v3693_v57, 0.0 }
  0xdc   :  { %v4321_v60 = vpop.f32.mrf.mxu0 }
  0xdd   :  { %v227_v62 = vmax.f32 %v4321_v60, 0.0  ;;  %v239_v4 = vpack.c.bf16 %v229_v59, %v228_v63 }
  0xde   :  { %v3696_v1 = vpop.f32.mrf.mxu0 }
  0xdf   :  { %v238_v2 = vpack.c.bf16 %v227_v62, %v226_v61  ;;  %v232_v12 = vmax.f32 %v3696_v1, 0.0 }
  0xe0   :  { %v4325_v5 = vpop.f32.mrf.mxu0 }
  0xe1   :  { %3714 = vmatprep.mubr.msk.bf16.mxu1 %vm274_vm2, %v238_v2  ;;  %v230_v10 = vmax.f32 %v4325_v5, 0.0 }
  0xe2   :  { %v3697_v6 = vpop.f32.mrf.mxu0  ;;  %3715 = vmatmul.mubr.msk.bf16.gmra.mxu1 %vm274_vm2, %v239_v4 }
  0xe3   :  { %v4329_v7 = vpack.c.bf16 %v3697_v6, %v3696_v1  ;;  %v233_v8 = vmax.f32 %v3697_v6, 0.0 }
  0xe4   :  { %v4331_v9 = vpop.f32.mrf.mxu0 }
  0xe5   :  { %v231_v11 = vmax.f32 %v4331_v9, 0.0  ;;  %v241_v14 = vpack.c.bf16 %v233_v8, %v232_v12 }
  0xe7   :  { %v240_v13 = vpack.c.bf16 %v231_v11, %v230_v10 }
  0xe9   :  { %3718 = vmatprep.mubr.msk.bf16.mxu1 %vm274_vm2, %v240_v13 }
  0xea   :  { %3719 = vmatmul.mubr.msk.bf16.gmra.mxu1 %vm274_vm2, %v241_v14 }
 0x192   :  { %v3708_v17 = vpop.f32.mrf.mxu1 }
 0x193   :  { %v398_v24 = vmax.f32 %v3708_v17, 0.0 }
 0x194   :  { %v333_v18 = vpop.f32.mrf.mxu1 }
 0x195   :  { %v396_v22 = vmax.f32 %v333_v18, 0.0 }
 0x196   :  { %v3709_v19 = vpop.f32.mrf.mxu1 }
 0x197   :  { %v399_v20 = vmax.f32 %v3709_v19, 0.0 }
 0x198   :  { %v336_v21 = vpop.f32.mrf.mxu1 }
 0x199   :  { %v397_v23 = vmax.f32 %v336_v21, 0.0  ;;  %v413_v33 = vpack.c.bf16 %v399_v20, %v398_v24 }
 0x19a   :  { %v3712_v25 = vpop.f32.mrf.mxu1 }
 0x19b   :  { %v412_v26 = vpack.c.bf16 %v397_v23, %v396_v22  ;;  %v402_v43 = vmax.f32 %v3712_v25, 0.0 }
 0x19c   :  { %v349_v35 = vpop.f32.mrf.mxu1 }
 0x19d   :  { %3730 = vmatprep.mubr.msk.bf16.mxu0 %vm274_vm2, %v412_v26  ;;  %v400_v41 = vmax.f32 %v349_v35, 0.0 }
 0x19e   :  { %v3713_v37 = vpop.f32.mrf.mxu1  ;;  %3731 = vmatmul.mubr.msk.bf16.vlgmr.msra.gmra.mxu0 %vm274_vm2, %v413_v33 }
 0x19f   :  { %v403_v39 = vmax.f32 %v3713_v37, 0.0 }
 0x1a0   :  { %v352_v40 = vpop.f32.mrf.mxu1 }
 0x1a1   :  { %v401_v42 = vmax.f32 %v352_v40, 0.0  ;;  %v415_v48 = vpack.c.bf16 %v403_v39, %v402_v43  ;;  %v4368_v39 = vld [vmem:[%s5320_s4 + $0x18] sm:$0xff]   ;;  %v4391_v43 = vld [vmem:[%s5320_s4] sm:$0xff]  }
 0x1a2   :  { %v3716_v44 = vpop.f32.mrf.mxu1  ;;  %3746 = vmatprep.subr.bf16.mxu1 %v4368_v39 }
 0x1a3   :  { %v414_v46 = vpack.c.bf16 %v401_v42, %v400_v41  ;;  %v406_v57 = vmax.f32 %v3716_v44, 0.0  ;;  %v4373_v41 = vld [vmem:[%s5320_s4 + $0x10] sm:$0xff]   ;;  %3747 = vmatpush3.bf16.msra.mxu1 %v4368_v39  ;;  %v4383_v42 = vld [vmem:[%s5320_s4 + $0x8] sm:$0xff]   ;;  %v242_v44 = vpack.c.bf16 %v4301_v38, %v4297_v34  ;;  %v244_v34 = vpack.c.bf16 %v4311_v49, %v4305_v45 }
 0x1a4   :  { %v365_v50 = vpop.f32.mrf.mxu1  ;;  %3748 = vmatprep.subr.bf16.mxu1 %v4373_v41  ;;  %v246_v49 = vpack.c.bf16 %v4321_v60, %v4315_v56 }
 0x1a5   :  { %3734 = vmatprep.mubr.msk.bf16.mxu0 %vm274_vm2, %v414_v46  ;;  %v404_v54 = vmax.f32 %v365_v50, 0.0 }
 0x1a6   :  { %v3717_v51 = vpop.f32.mrf.mxu1  ;;  %3735 = vmatmul.mubr.msk.bf16.gmra.mxu0 %vm274_vm2, %v415_v48  ;;  %v567_v48 = vunpack.c.l.bf16 %v4299_v36 }
 0x1a7   :  { %v407_v52 = vmax.f32 %v3717_v51, 0.0  ;;  %3749 = vmatpush3.bf16.msra.mxu1 %v4373_v41 }
 0x1a8   :  { %v368_v53 = vpop.f32.mrf.mxu1  ;;  %3750 = vmatprep.subr.bf16.mxu1 %v4383_v42 }
 0x1a9   :  { %v405_v55 = vmax.f32 %v368_v53, 0.0  ;;  %v417_v62 = vpack.c.bf16 %v407_v52, %v406_v57  ;;  %v565_v52 = vunpack.c.l.bf16 %v242_v44  ;;  %v568_v53 = vunpack.c.h.bf16 %v4299_v36 }
 0x1aa   :  { %v3720_v59 = vpop.f32.mrf.mxu1 }
 0x1ab   :  { %v416_v61 = vpack.c.bf16 %v405_v55, %v404_v54  ;;  %v410_v10 = vmax.f32 %v3720_v59, 0.0  ;;  %3751 = vmatpush3.bf16.msra.mxu1 %v4383_v42  ;;  %v566_v59 = vunpack.c.h.bf16 %v242_v44 }
 0x1ac   :  { %v381_v63 = vpop.f32.mrf.mxu1  ;;  %3752 = vmatprep.subr.bf16.mxu1 %v4391_v43 }
 0x1ad   :  { %3738 = vmatprep.mubr.msk.bf16.mxu0 %vm274_vm2, %v416_v61  ;;  %v408_v6 = vmax.f32 %v381_v63, 0.0 }
 0x1ae   :  { %v3721_v1 = vpop.f32.mrf.mxu1  ;;  %3739 = vmatmul.mubr.msk.bf16.gmra.mxu0 %vm274_vm2, %v417_v62 }
 0x1af   :  { %v411_v2 = vmax.f32 %v3721_v1, 0.0  ;;  %3753 = vmatpush3.bf16.msra.mxu1 %v4391_v43 }
 0x1b0   :  { %v384_v4 = vpop.f32.mrf.mxu1 }
 0x1b1   :  { %v409_v8 = vmax.f32 %v384_v4, 0.0  ;;  %v419_v12 = vpack.c.bf16 %v411_v2, %v410_v10 }
 0x1b3   :  { %v418_v11 = vpack.c.bf16 %v409_v8, %v408_v6  ;;  %v569_v6 = vunpack.c.l.bf16 %v244_v34 }
 0x1b5   :  { %3742 = vmatprep.mubr.msk.bf16.mxu0 %vm274_vm2, %v418_v11  ;;  %v570_v11 = vunpack.c.h.bf16 %v244_v34 }
 0x1b6   :  { %3743 = vmatmul.mubr.msk.bf16.gmra.mxu0 %vm274_vm2, %v419_v12 }
 0x25e   :  { %v3732_v13 = vpop.f32.mrf.mxu0 }
 0x25f   :  { %601 = vrot.lane.b32.xlu1 %v3732_v13, %s4139_s28  ;;  %v571_v13 = vunpack.c.l.bf16 %v4309_v47 }
 0x260   :  { %v502_v14 = vpop.f32.mrf.mxu0 }
 0x261   :  { %597 = vrot.lane.b32.xlu0 %v502_v14, %s4139_s28 }
 0x262   :  { %v3733_v17 = vpop.f32.mrf.mxu0 }
 0x263   :  { %603 = vrot.lane.b32.xlu1 %v3733_v17, %s4139_s28 }
 0x264   :  { %v505_v18 = vpop.f32.mrf.mxu0 }
 0x265   :  { %599 = vrot.lane.b32.xlu0 %v505_v18, %s4139_s28 }
 0x266   :  { %v3736_v19 = vpop.f32.mrf.mxu0 }
 0x268   :  { %v518_v20 = vpop.f32.mrf.mxu0 }
 0x269   :  { %605 = vrot.lane.b32.xlu0 %v518_v20, %s4139_s28  ;;  %v572_v20 = vunpack.c.h.bf16 %v4309_v47  ;;  %v248_v47 = vpack.c.bf16 %v4331_v9, %v4325_v5 }
 0x26a   :  { %v3737_v21 = vpop.f32.mrf.mxu0 }
 0x26b   :  { %v577_v5 = vunpack.c.l.bf16 %v248_v47 }
 0x26c   :  { %v521_v22 = vpop.f32.mrf.mxu0 }
 0x26d   :  { %609 = vrot.lane.b32.xlu0 %v3736_v19, %s4139_s28  ;;  %607 = vrot.lane.b32.xlu1 %v521_v22, %s4139_s28 }
 0x26e   :  { %v3740_v23 = vpop.f32.mrf.mxu0 }
 0x270   :  { %v534_v24 = vpop.f32.mrf.mxu0 }
 0x271   :  { %611 = vrot.lane.b32.xlu1 %v3737_v21, %s4139_s28  ;;  %613 = vrot.lane.b32.xlu0 %v534_v24, %s4139_s28  ;;  %v573_v24 = vunpack.c.l.bf16 %v246_v49 }
 0x272   :  { %v3741_v25 = vpop.f32.mrf.mxu0 }
 0x274   :  { %v537_v26 = vpop.f32.mrf.mxu0 }
 0x275   :  { %617 = vrot.lane.b32.xlu0 %v3740_v23, %s4139_s28  ;;  %615 = vrot.lane.b32.xlu1 %v537_v26, %s4139_s28 }
 0x276   :  { %v3744_v33 = vpop.f32.mrf.mxu0 }
 0x278   :  { %v550_v35 = vpop.f32.mrf.mxu0 }
 0x279   :  { %619 = vrot.lane.b32.xlu1 %v3741_v25, %s4139_s28  ;;  %621 = vrot.lane.b32.xlu0 %v550_v35, %s4139_s28 }
 0x27a   :  { %v3745_v37 = vpop.f32.mrf.mxu0 }
 0x27c   :  { %v553_v40 = vpop.f32.mrf.mxu0 }
 0x27d   :  { %625 = vrot.lane.b32.xlu0 %v3744_v33, %s4139_s28  ;;  %623 = vrot.lane.b32.xlu1 %v553_v40, %s4139_s28  ;;  %v574_v33 = vunpack.c.h.bf16 %v246_v49  ;;  %v575_v40 = vunpack.c.l.bf16 %v4319_v58 }
 0x281   :  { %627 = vrot.lane.b32.xlu1 %v3745_v37, %s4139_s28 }
 0x2d1   :  { %v4398_v46 = vpop.permute.xlu1 %601 }
 0x2d2   :  { %v647_v51 = vadd.f32 %v4398_v46, %v567_v48 }
 0x2d3   :  { %v4401_v50 = vpop.permute.xlu0 %597 }
 0x2d4   :  { %v645_v55 = vadd.f32 %v4401_v50, %v565_v52  ;;  %v663_v38 = vmax.f32 %v647_v51, 0.0 }
 0x2d5   :  { %v4405_v54 = vpop.permute.xlu1 %603 }
 0x2d6   :  { %v648_v57 = vadd.f32 %v4405_v54, %v568_v53  ;;  %v661_v1 = vmax.f32 %v645_v55, 0.0  ;;  %v576_v55 = vunpack.c.h.bf16 %v4319_v58  ;;  %v4461_v58 = vld [vmem:[%s5321_s5 + $0x18] sm:$0xff]  }
 0x2d7   :  { %v4409_v61 = vpop.permute.xlu0 %599  ;;  %3770 = vmatprep.subr.bf16.mxu0 %v4461_v58 }
 0x2d8   :  { %v664_v62 = vmax.f32 %v648_v57, 0.0  ;;  %v646_v63 = vadd.f32 %v4409_v61, %v566_v59  ;;  %3771 = vmatpush3.bf16.msra.mxu0 %v4461_v58 }
 0x2da   :  { %v662_v2 = vmax.f32 %v646_v63, 0.0  ;;  %v678_v4 = vpack.c.bf16 %v664_v62, %v663_v38 }
 0x2db   :  { %v4414_v36 = vpop.permute.xlu0 %605 }
 0x2dc   :  { %695 = vrot.lane.b32.xlu1 %v678_v4, %s4139_s28  ;;  %v677_v8 = vpack.c.bf16 %v662_v2, %v661_v1  ;;  %v649_v10 = vadd.f32 %v4414_v36, %v569_v6  ;;  %v578_v1 = vunpack.c.h.bf16 %v248_v47  ;;  %v579_v6 = vunpack.c.l.bf16 %v4329_v7 }
 0x2de   :  { %693 = vrot.lane.b32.xlu0 %v677_v8, %s4139_s28  ;;  %v665_v17 = vmax.f32 %v649_v10, 0.0 }
 0x2df   :  { %v4419_v12 = vpop.permute.xlu0 %609  ;;  %v4421_v45 = vpop.permute.xlu1 %607 }
 0x2e0   :  { %v650_v14 = vadd.f32 %v4421_v45, %v570_v11  ;;  %v651_v18 = vadd.f32 %v4419_v12, %v571_v13  ;;  %v4468_v11 = vld [vmem:[%s5321_s5 + $0x10] sm:$0xff]  }
 0x2e1   :  { %3772 = vmatprep.subr.bf16.mxu0 %v4468_v11 }
 0x2e2   :  { %v666_v19 = vmax.f32 %v650_v14, 0.0  ;;  %v667_v26 = vmax.f32 %v651_v18, 0.0  ;;  %3773 = vmatpush3.bf16.msra.mxu0 %v4468_v11 }
 0x2e3   :  { %v4429_v21 = vpop.permute.xlu1 %611  ;;  %v4431_v22 = vpop.permute.xlu0 %613 }
 0x2e4   :  { %v652_v23 = vadd.f32 %v4429_v21, %v572_v20  ;;  %v679_v25 = vpack.c.bf16 %v666_v19, %v665_v17  ;;  %v653_v60 = vadd.f32 %v4431_v22, %v573_v24  ;;  %v580_v17 = vunpack.c.h.bf16 %v4329_v7  ;;  %v4481_v19 = vld [vmem:[%s5321_s5 + $0x8] sm:$0xff]  }
 0x2e5   :  { %3774 = vmatprep.subr.bf16.mxu0 %v4481_v19 }
 0x2e6   :  { %v668_v56 = vmax.f32 %v652_v23, 0.0  ;;  %697 = vrot.lane.b32.xlu0 %v679_v25, %s4139_s28  ;;  %v669_v51 = vmax.f32 %v653_v60, 0.0  ;;  %3775 = vmatpush3.bf16.msra.mxu0 %v4481_v19 }
 0x2e7   :  { %v4436_v35 = vpop.permute.xlu0 %617  ;;  %v4438_v37 = vpop.permute.xlu1 %615 }
 0x2e8   :  { %v654_v44 = vadd.f32 %v4438_v37, %v574_v33  ;;  %v680_v48 = vpack.c.bf16 %v668_v56, %v667_v26  ;;  %v655_v52 = vadd.f32 %v4436_v35, %v575_v40 }
 0x2ea   :  { %v670_v53 = vmax.f32 %v654_v44, 0.0  ;;  %699 = vrot.lane.b32.xlu1 %v680_v48, %s4139_s28  ;;  %v671_v38 = vmax.f32 %v655_v52, 0.0  ;;  %v4509_v52 = vld [vmem:[%s5322_s6 + $0x18] sm:$0xff]  }
 0x2eb   :  { %v4447_v57 = vpop.permute.xlu1 %619  ;;  %v4449_v59 = vpop.permute.xlu0 %621  ;;  %3794 = vmatprep.subr.bf16.mxu1 %v4509_v52 }
 0x2ec   :  { %v656_v34 = vadd.f32 %v4447_v57, %v576_v55  ;;  %v681_v9 = vpack.c.bf16 %v670_v53, %v669_v51  ;;  %v657_v63 = vadd.f32 %v4449_v59, %v577_v5  ;;  %v4500_v51 = vld [vmem:[%s5321_s5] sm:$0xff]   ;;  %v4514_v53 = vld [vmem:[%s5322_s6 + $0x10] sm:$0xff]  }
 0x2ed   :  { %3776 = vmatprep.subr.bf16.mxu0 %v4500_v51 }
 0x2ee   :  { %v672_v62 = vmax.f32 %v656_v34, 0.0  ;;  %701 = vrot.lane.b32.xlu0 %v681_v9, %s4139_s28  ;;  %v673_v49 = vmax.f32 %v657_v63, 0.0  ;;  %3777 = vmatpush3.bf16.msra.mxu0 %v4500_v51 }
 0x2ef   :  { %v4454_v2 = vpop.permute.xlu0 %625  ;;  %v4456_v4 = vpop.permute.xlu1 %623  ;;  %4095 = vmatprep.subr.msk.bf16.mxu0 %vm117_vm0, %v4183_v0  ;;  %v4522_v0 = vld [vmem:[%s5322_s6 + $0x8] sm:$0xff]  }
 0x2f0   :  { %v658_v8 = vadd.f32 %v4456_v4, %v578_v1  ;;  %v682_v10 = vpack.c.bf16 %v672_v62, %v671_v38  ;;  %v659_v13 = vadd.f32 %v4454_v2, %v579_v6 }
 0x2f2   :  { %v674_v14 = vmax.f32 %v658_v8, 0.0  ;;  %703 = vrot.lane.b32.xlu1 %v682_v10, %s4139_s28  ;;  %v675_v24 = vmax.f32 %v659_v13, 0.0 }
 0x2f3   :  { %v4475_v18 = vpop.permute.xlu1 %627 }
 0x2f4   :  { %v660_v20 = vadd.f32 %v4475_v18, %v580_v17  ;;  %v683_v23 = vpack.c.bf16 %v674_v14, %v673_v49 }
 0x2f6   :  { %v676_v25 = vmax.f32 %v660_v20, 0.0  ;;  %705 = vrot.lane.b32.xlu0 %v683_v23, %s4139_s28 }
 0x2f8   :  { %v684_v7 = vpack.c.bf16 %v676_v25, %v675_v24 }
 0x2fa   :  { %707 = vrot.lane.b32.xlu1 %v684_v7, %s4139_s28 }
 0x34e   :  { %v696_v56 = vpop.permute.xlu1 %695 }
 0x350   :  { %v694_v26 = vpop.permute.xlu0 %693 }
 0x351   :  { %3754 = vmatprep.mubr.msk.bf16.mxu1 %vm274_vm2, %v694_v26 }
 0x352   :  { %3755 = vmatmul.mubr.msk.bf16.vlgmr.msra.gmra.mxu1 %vm274_vm2, %v696_v56 }
 0x353   :  { %3795 = vmatpush3.bf16.msra.mxu1 %v4509_v52 }
 0x354   :  { %3796 = vmatprep.subr.bf16.mxu1 %v4514_v53 }
 0x357   :  { %3797 = vmatpush3.bf16.msra.mxu1 %v4514_v53 }
 0x358   :  { %v698_v60 = vpop.permute.xlu0 %697  ;;  %3798 = vmatprep.subr.bf16.mxu1 %v4522_v0 }
 0x359   :  { %3758 = vmatprep.mubr.msk.bf16.mxu1 %vm274_vm2, %v698_v60 }
 0x35b   :  { %3799 = vmatpush3.bf16.msra.mxu1 %v4522_v0 }
 0x35c   :  { %v700_v33 = vpop.permute.xlu1 %699 }
 0x35d   :  { %3759 = vmatmul.mubr.msk.bf16.gmra.mxu1 %vm274_vm2, %v700_v33 }
 0x360   :  { %v702_v47 = vpop.permute.xlu0 %701 }
 0x361   :  { %3762 = vmatprep.mubr.msk.bf16.mxu1 %vm274_vm2, %v702_v47 }
 0x364   :  { %v704_v40 = vpop.permute.xlu1 %703 }
 0x365   :  { %3763 = vmatmul.mubr.msk.bf16.gmra.mxu1 %vm274_vm2, %v704_v40 }
 0x368   :  { %v706_v44 = vpop.permute.xlu0 %705 }
 0x369   :  { %3766 = vmatprep.mubr.msk.bf16.mxu1 %vm274_vm2, %v706_v44 }
 0x36c   :  { %v708_v48 = vpop.permute.xlu1 %707 }
 0x36d   :  { %3767 = vmatmul.mubr.msk.bf16.gmra.mxu1 %vm274_vm2, %v708_v48 }
 0x412   :  { %v3756_v55 = vpop.f32.mrf.mxu1 }
 0x413   :  { %v856_v1 = vmax.f32 %v3756_v55, 0.0 }
 0x414   :  { %v791_v34 = vpop.f32.mrf.mxu1 }
 0x415   :  { %v854_v62 = vmax.f32 %v791_v34, 0.0 }
 0x416   :  { %v3757_v5 = vpop.f32.mrf.mxu1 }
 0x417   :  { %v857_v9 = vmax.f32 %v3757_v5, 0.0 }
 0x418   :  { %v794_v38 = vpop.f32.mrf.mxu1 }
 0x419   :  { %v855_v63 = vmax.f32 %v794_v38, 0.0  ;;  %v871_v8 = vpack.c.bf16 %v857_v9, %v856_v1  ;;  %v3313_v1 = vld [vmem:[%s5317_s0 + $0x80] sm:$0xff] }
 0x41b   :  { %v870_v6 = vpack.c.bf16 %v855_v63, %v854_v62 }
 0x41d   :  { %v3760_v10 = vpop.f32.mrf.mxu1  ;;  %3778 = vmatprep.mubr.msk.bf16.mxu0 %vm274_vm2, %v870_v6  ;;  %v3314_v6 = vld [vmem:[%s5317_s0 + $0x88] sm:$0xff] }
 0x41e   :  { %3779 = vmatmul.mubr.msk.bf16.vlgmr.msra.gmra.mxu0 %vm274_vm2, %v871_v8  ;;  %v860_v24 = vmax.f32 %v3760_v10, 0.0 }
 0x41f   :  { %v807_v49 = vpop.f32.mrf.mxu1  ;;  %3819 = vmatpush3.bf16.msra.mxu0 %v4195_v3 }
 0x420   :  { %3860 = vmatprep.subr.bf16.mxu0 %v4279_v30  ;;  %v858_v20 = vmax.f32 %v807_v49, 0.0 }
 0x421   :  { %v3761_v13 = vpop.f32.mrf.mxu1 }
 0x422   :  { %v861_v14 = vmax.f32 %v3761_v13, 0.0 }
 0x423   :  { %v810_v17 = vpop.f32.mrf.mxu1 }
 0x424   :  { %v859_v23 = vmax.f32 %v810_v17, 0.0  ;;  %v873_v26 = vpack.c.bf16 %v861_v14, %v860_v24  ;;  %v1226_v14 = vpack.c.bf16 %v3314_v6, %v3313_v1  ;;  %v3317_v24 = vld [vmem:[%s5317_s0 + $0xa0] sm:$0xff] }
 0x425   :  { %v3764_v25 = vpop.f32.mrf.mxu1 }
 0x426   :  { %v872_v7 = vpack.c.bf16 %v859_v23, %v858_v20  ;;  %v864_v48 = vmax.f32 %v3764_v25, 0.0  ;;  %v3315_v20 = vld [vmem:[%s5317_s0 + $0x90] sm:$0xff]  ;;  %v3316_v23 = vld [vmem:[%s5317_s0 + $0x98] sm:$0xff]  ;;  %v3318_v25 = vld [vmem:[%s5317_s0 + $0xa8] sm:$0xff] }
 0x427   :  { %v823_v56 = vpop.f32.mrf.mxu1 }
 0x428   :  { %3782 = vmatprep.mubr.msk.bf16.mxu0 %vm274_vm2, %v872_v7  ;;  %v862_v40 = vmax.f32 %v823_v56, 0.0  ;;  %v1227_v7 = vpack.c.bf16 %v3316_v23, %v3315_v20  ;;  %v3319_v56 = vld [vmem:[%s5317_s0 + $0xb0] sm:$0xff] }
 0x429   :  { %v3765_v60 = vpop.f32.mrf.mxu1  ;;  %3783 = vmatmul.mubr.msk.bf16.gmra.mxu0 %vm274_vm2, %v873_v26  ;;  %v1228_v26 = vpack.c.bf16 %v3318_v25, %v3317_v24 }
 0x42a   :  { %v865_v33 = vmax.f32 %v3765_v60, 0.0  ;;  %v3320_v60 = vld [vmem:[%s5317_s0 + $0xb8] sm:$0xff] }
 0x42b   :  { %v826_v47 = vpop.f32.mrf.mxu1 }
 0x42c   :  { %v863_v44 = vmax.f32 %v826_v47, 0.0  ;;  %v875_v5 = vpack.c.bf16 %v865_v33, %v864_v48  ;;  %v3321_v33 = vld [vmem:[%s5317_s0 + $0xc0] sm:$0xff]  ;;  %v3322_v47 = vld [vmem:[%s5317_s0 + $0xc8] sm:$0xff]  ;;  %v3324_v48 = vld [vmem:[%s5317_s0 + $0xd8] sm:$0xff] }
 0x42d   :  { %v3768_v55 = vpop.f32.mrf.mxu1 }
 0x42e   :  { %v874_v34 = vpack.c.bf16 %v863_v44, %v862_v40  ;;  %v868_v49 = vmax.f32 %v3768_v55, 0.0  ;;  %v1229_v40 = vpack.c.bf16 %v3320_v60, %v3319_v56  ;;  %v1230_v44 = vpack.c.bf16 %v3322_v47, %v3321_v33  ;;  %v3326_v55 = vld [vmem:[%s5317_s0 + $0xe8] sm:$0xff] }
 0x42f   :  { %v839_v9 = vpop.f32.mrf.mxu1 }
 0x430   :  { %3786 = vmatprep.mubr.msk.bf16.mxu0 %vm274_vm2, %v874_v34  ;;  %v866_v8 = vmax.f32 %v839_v9, 0.0  ;;  %v3328_v9 = vld [vmem:[%s5317_s0 + $0xf8] sm:$0xff] }
 0x431   :  { %v3769_v38 = vpop.f32.mrf.mxu1  ;;  %3787 = vmatmul.mubr.msk.bf16.gmra.mxu0 %vm274_vm2, %v875_v5 }
 0x432   :  { %v869_v62 = vmax.f32 %v3769_v38, 0.0 }
 0x433   :  { %v842_v63 = vpop.f32.mrf.mxu1 }
 0x434   :  { %v867_v10 = vmax.f32 %v842_v63, 0.0  ;;  %v877_v17 = vpack.c.bf16 %v869_v62, %v868_v49 }
 0x436   :  { %v876_v13 = vpack.c.bf16 %v867_v10, %v866_v8 }
 0x438   :  { %3790 = vmatprep.mubr.msk.bf16.mxu0 %vm274_vm2, %v876_v13 }
 0x439   :  { %3791 = vmatmul.mubr.msk.bf16.gmra.mxu0 %vm274_vm2, %v877_v17 }
 0x43a   :  { %3820 = vmatprep.mubr.msk.bf16.mxu0 %vm92_vm1, %v1226_v14 }
 0x441   :  { %3821 = vmatmul.mubr.msk.bf16.vlgmr.msra.gmra.mxu0 %vm92_vm1, %v1227_v7 }
 0x442   :  { %3824 = vmatprep.mubr.msk.bf16.mxu0 %vm92_vm1, %v1228_v26  ;;  %3861 = vmatpush3.bf16.msra.mxu0 %v4279_v30  ;;  %v3323_v30 = vld [vmem:[%s5317_s0 + $0xd0] sm:$0xff] }
 0x443   :  { %3862 = vmatprep.subr.bf16.mxu0 %v4284_v31  ;;  %v1231_v34 = vpack.c.bf16 %v3324_v48, %v3323_v30 }
 0x446   :  { %3863 = vmatpush3.bf16.msra.mxu0 %v4284_v31  ;;  %v3325_v31 = vld [vmem:[%s5317_s0 + $0xe0] sm:$0xff] }
 0x447   :  { %3864 = vmatprep.subr.bf16.mxu0 %v4292_v32  ;;  %v1232_v5 = vpack.c.bf16 %v3326_v55, %v3325_v31 }
 0x449   :  { %3825 = vmatmul.mubr.msk.bf16.gmra.mxu0 %vm92_vm1, %v1229_v40 }
 0x44a   :  { %3828 = vmatprep.mubr.msk.bf16.mxu0 %vm92_vm1, %v1230_v44  ;;  %3865 = vmatpush3.bf16.msra.mxu0 %v4292_v32  ;;  %v3327_v32 = vld [vmem:[%s5317_s0 + $0xf0] sm:$0xff] }
 0x44b   :  { %3866 = vmatprep.subr.bf16.mxu0 %v4340_v16  ;;  %v1233_v38 = vpack.c.bf16 %v3328_v9, %v3327_v32 }
 0x44e   :  { %3867 = vmatpush3.bf16.msra.mxu0 %v4340_v16  ;;  %v4604_v16 = vld [vmem:[%s5322_s6] sm:$0xff]  }
 0x44f   :  { %3908 = vmatprep.subr.bf16.mxu0 %v4461_v58  ;;  %3800 = vmatprep.subr.bf16.mxu1 %v4604_v16 }
 0x450   :  { %3801 = vmatpush3.bf16.msra.mxu1 %v4604_v16 }
 0x451   :  { %3829 = vmatmul.mubr.msk.bf16.gmra.mxu0 %vm92_vm1, %v1231_v34  ;;  %3836 = vmatprep.subr.bf16.mxu1 %v4228_v15 }
 0x452   :  { %3832 = vmatprep.mubr.msk.bf16.mxu0 %vm92_vm1, %v1232_v5 }
 0x459   :  { %3833 = vmatmul.mubr.msk.bf16.gmra.mxu0 %vm92_vm1, %v1233_v38 }
 0x4de   :  { %v3780_v62 = vpop.f32.mrf.mxu0 }
 0x4df   :  { %v1025_v13 = vmax.f32 %v3780_v62, 0.0 }
 0x4e0   :  { %v960_v63 = vpop.f32.mrf.mxu0 }
 0x4e1   :  { %v1023_v10 = vmax.f32 %v960_v63, 0.0 }
 0x4e2   :  { %v3781_v1 = vpop.f32.mrf.mxu0 }
 0x4e3   :  { %v1026_v6 = vmax.f32 %v3781_v1, 0.0 }
 0x4e4   :  { %v963_v8 = vpop.f32.mrf.mxu0 }
 0x4e5   :  { %v1024_v49 = vmax.f32 %v963_v8, 0.0  ;;  %v1040_v17 = vpack.c.bf16 %v1026_v6, %v1025_v13 }
 0x4e7   :  { %v1039_v14 = vpack.c.bf16 %v1024_v49, %v1023_v10 }
 0x4e9   :  { %v3784_v20 = vpop.f32.mrf.mxu0  ;;  %3802 = vmatprep.mubr.msk.bf16.mxu1 %vm274_vm2, %v1039_v14 }
 0x4ea   :  { %3803 = vmatmul.mubr.msk.bf16.vlgmr.msra.gmra.mxu1 %vm274_vm2, %v1040_v17  ;;  %v1029_v60 = vmax.f32 %v3784_v20, 0.0 }
 0x4eb   :  { %v976_v23 = vpop.f32.mrf.mxu0  ;;  %3837 = vmatpush3.bf16.msra.mxu1 %v4228_v15 }
 0x4ec   :  { %3838 = vmatprep.subr.bf16.mxu1 %v4258_v27  ;;  %v1027_v26 = vmax.f32 %v976_v23, 0.0 }
 0x4ed   :  { %v3785_v24 = vpop.f32.mrf.mxu0 }
 0x4ee   :  { %v1030_v25 = vmax.f32 %v3785_v24, 0.0 }
 0x4ef   :  { %v979_v7 = vpop.f32.mrf.mxu0  ;;  %3839 = vmatpush3.bf16.msra.mxu1 %v4258_v27 }
 0x4f0   :  { %v1028_v56 = vmax.f32 %v979_v7, 0.0  ;;  %3840 = vmatprep.subr.bf16.mxu1 %v4265_v28  ;;  %v1042_v40 = vpack.c.bf16 %v1030_v25, %v1029_v60 }
 0x4f1   :  { %v3788_v33 = vpop.f32.mrf.mxu0 }
 0x4f2   :  { %v1041_v47 = vpack.c.bf16 %v1028_v56, %v1027_v26  ;;  %v1033_v55 = vmax.f32 %v3788_v33, 0.0 }
 0x4f3   :  { %v992_v44 = vpop.f32.mrf.mxu0  ;;  %3841 = vmatpush3.bf16.msra.mxu1 %v4265_v28 }
 0x4f4   :  { %3806 = vmatprep.mubr.msk.bf16.mxu1 %vm274_vm2, %v1041_v47  ;;  %3842 = vmatprep.subr.bf16.mxu1 %v4272_v29  ;;  %v1031_v48 = vmax.f32 %v992_v44, 0.0 }
 0x4f5   :  { %v3789_v15 = vpop.f32.mrf.mxu0  ;;  %3807 = vmatmul.mubr.msk.bf16.gmra.mxu1 %vm274_vm2, %v1042_v40 }
 0x4f6   :  { %v1034_v30 = vmax.f32 %v3789_v15, 0.0 }
 0x4f7   :  { %v995_v27 = vpop.f32.mrf.mxu0  ;;  %3843 = vmatpush3.bf16.msra.mxu1 %v4272_v29 }
 0x4f8   :  { %v1032_v31 = vmax.f32 %v995_v27, 0.0  ;;  %3884 = vmatprep.subr.bf16.mxu1 %v4368_v39  ;;  %v1044_v32 = vpack.c.bf16 %v1034_v30, %v1033_v55 }
 0x4f9   :  { %v3792_v34 = vpop.f32.mrf.mxu0 }
 0x4fa   :  { %v1043_v5 = vpack.c.bf16 %v1032_v31, %v1031_v48  ;;  %v1037_v6 = vmax.f32 %v3792_v34, 0.0 }
 0x4fb   :  { %v1008_v28 = vpop.f32.mrf.mxu0 }
 0x4fc   :  { %3810 = vmatprep.mubr.msk.bf16.mxu1 %vm274_vm2, %v1043_v5  ;;  %v1035_v63 = vmax.f32 %v1008_v28, 0.0 }
 0x4fd   :  { %v3793_v9 = vpop.f32.mrf.mxu0  ;;  %3811 = vmatmul.mubr.msk.bf16.gmra.mxu1 %vm274_vm2, %v1044_v32 }
 0x4fe   :  { %v1038_v38 = vmax.f32 %v3793_v9, 0.0 }
 0x4ff   :  { %v1011_v62 = vpop.f32.mrf.mxu0 }
 0x500   :  { %v1036_v1 = vmax.f32 %v1011_v62, 0.0  ;;  %v1046_v10 = vpack.c.bf16 %v1038_v38, %v1037_v6 }
 0x501   :  { %v3822_v29 = vpop.f32.mrf.mxu0 }
 0x502   :  { %v1045_v8 = vpack.c.bf16 %v1036_v1, %v1035_v63  ;;  %v1357_v7 = vmax.f32 %v3822_v29, 0.0 }
 0x503   :  { %v1292_v49 = vpop.f32.mrf.mxu0 }
 0x504   :  { %3814 = vmatprep.mubr.msk.bf16.mxu1 %vm274_vm2, %v1045_v8  ;;  %v1355_v23 = vmax.f32 %v1292_v49, 0.0 }
 0x505   :  { %3815 = vmatmul.mubr.msk.bf16.gmra.mxu1 %vm274_vm2, %v1046_v10  ;;  %v3823_v13 = vpop.f32.mrf.mxu0 }
 0x506   :  { %v4625_v14 = vpack.c.bf16 %v3823_v13, %v3822_v29  ;;  %v1358_v17 = vmax.f32 %v3823_v13, 0.0 }
 0x507   :  { %v1295_v20 = vpop.f32.mrf.mxu0 }
 0x508   :  { %v1356_v24 = vmax.f32 %v1295_v20, 0.0  ;;  %v4627_v25 = vpack.c.bf16 %v1295_v20, %v1292_v49  ;;  %v1372_v60 = vpack.c.bf16 %v1358_v17, %v1357_v7 }
 0x509   :  { %v3826_v26 = vpop.f32.mrf.mxu0 }
 0x50a   :  { %v1371_v56 = vpack.c.bf16 %v1356_v24, %v1355_v23  ;;  %v1361_v31 = vmax.f32 %v3826_v26, 0.0 }
 0x50b   :  { %v1308_v33 = vpop.f32.mrf.mxu0 }
 0x50c   :  { %3844 = vmatprep.mubr.msk.bf16.mxu1 %vm274_vm2, %v1371_v56  ;;  %v1359_v30 = vmax.f32 %v1308_v33, 0.0 }
 0x50d   :  { %v3827_v47 = vpop.f32.mrf.mxu0  ;;  %3845 = vmatmul.mubr.msk.bf16.vlgmr.msra.gmra.mxu1 %vm274_vm2, %v1372_v60 }
 0x50e   :  { %v4631_v40 = vpack.c.bf16 %v3827_v47, %v3826_v26  ;;  %3885 = vmatpush3.bf16.msra.mxu1 %v4368_v39  ;;  %v1362_v44 = vmax.f32 %v3827_v47, 0.0 }
 0x50f   :  { %v1311_v15 = vpop.f32.mrf.mxu0  ;;  %3886 = vmatprep.subr.bf16.mxu1 %v4373_v41 }
 0x510   :  { %v1360_v27 = vmax.f32 %v1311_v15, 0.0  ;;  %v4635_v48 = vpack.c.bf16 %v1311_v15, %v1308_v33  ;;  %v1374_v5 = vpack.c.bf16 %v1362_v44, %v1361_v31 }
 0x511   :  { %v3830_v55 = vpop.f32.mrf.mxu0 }
 0x512   :  { %v1373_v34 = vpack.c.bf16 %v1360_v27, %v1359_v30  ;;  %3887 = vmatpush3.bf16.msra.mxu1 %v4373_v41  ;;  %v1365_v1 = vmax.f32 %v3830_v55, 0.0 }
 0x513   :  { %v1324_v32 = vpop.f32.mrf.mxu0  ;;  %3888 = vmatprep.subr.bf16.mxu1 %v4383_v42 }
 0x514   :  { %3848 = vmatprep.mubr.msk.bf16.mxu1 %vm274_vm2, %v1373_v34  ;;  %v1363_v62 = vmax.f32 %v1324_v32, 0.0 }
 0x515   :  { %v3831_v39 = vpop.f32.mrf.mxu0  ;;  %3849 = vmatmul.mubr.msk.bf16.gmra.mxu1 %vm274_vm2, %v1374_v5 }
 0x516   :  { %v4641_v28 = vpack.c.bf16 %v3831_v39, %v3830_v55  ;;  %3889 = vmatpush3.bf16.msra.mxu1 %v4383_v42  ;;  %v1366_v9 = vmax.f32 %v3831_v39, 0.0 }
 0x517   :  { %v1327_v38 = vpop.f32.mrf.mxu0  ;;  %3890 = vmatprep.subr.bf16.mxu1 %v4391_v43 }
 0x518   :  { %v1364_v63 = vmax.f32 %v1327_v38, 0.0  ;;  %v4645_v41 = vpack.c.bf16 %v1327_v38, %v1324_v32  ;;  %v1376_v8 = vpack.c.bf16 %v1366_v9, %v1365_v1 }
 0x519   :  { %v3834_v6 = vpop.f32.mrf.mxu0 }
 0x51a   :  { %v1375_v29 = vpack.c.bf16 %v1364_v63, %v1363_v62  ;;  %3891 = vmatpush3.bf16.msra.mxu1 %v4391_v43  ;;  %v1369_v43 = vmax.f32 %v3834_v6, 0.0 }
 0x51b   :  { %v4648_v10 = vpop.f32.mrf.mxu0  ;;  %3932 = vmatprep.subr.bf16.mxu1 %v4509_v52 }
 0x51c   :  { %3852 = vmatprep.mubr.msk.bf16.mxu1 %vm274_vm2, %v1375_v29  ;;  %v1367_v20 = vmax.f32 %v4648_v10, 0.0 }
 0x51d   :  { %v3835_v42 = vpop.f32.mrf.mxu0  ;;  %3853 = vmatmul.mubr.msk.bf16.gmra.mxu1 %vm274_vm2, %v1376_v8 }
 0x51e   :  { %v4653_v49 = vpack.c.bf16 %v3835_v42, %v3834_v6  ;;  %v1370_v13 = vmax.f32 %v3835_v42, 0.0 }
 0x51f   :  { %v4655_v17 = vpop.f32.mrf.mxu0 }
 0x520   :  { %v1368_v23 = vmax.f32 %v4655_v17, 0.0  ;;  %v1378_v7 = vpack.c.bf16 %v1370_v13, %v1369_v43 }
 0x522   :  { %v1377_v24 = vpack.c.bf16 %v1368_v23, %v1367_v20 }
 0x524   :  { %3856 = vmatprep.mubr.msk.bf16.mxu1 %vm274_vm2, %v1377_v24 }
 0x525   :  { %3857 = vmatmul.mubr.msk.bf16.gmra.mxu1 %vm274_vm2, %v1378_v7 }
 0x5aa   :  { %v3804_v26 = vpop.f32.mrf.mxu1 }
 0x5ab   :  { %v1138_v56 = vadd.f32 %v3804_v26, %v4398_v46 }
 0x5ac   :  { %v1129_v60 = vpop.f32.mrf.mxu1 }
 0x5ad   :  { %1195 = vst.msk [vmem:[%s5323_s7 + $0x10] sm:$0xff] %vm1192_vm3, %v1138_v56  ;;  %v1130_v33 = vadd.f32 %v1129_v60, %v4401_v50 }
 0x5ae   :  { %v3805_v47 = vpop.f32.mrf.mxu1 }
 0x5af   :  { %1193 = vst.msk [vmem:[%s5323_s7] sm:$0xff] %vm1192_vm3, %v1130_v33  ;;  %v1141_v44 = vadd.f32 %v3805_v47, %v4405_v54 }
 0x5b0   :  { %v1132_v15 = vpop.f32.mrf.mxu1 }
 0x5b1   :  { %1196 = vst.msk [vmem:[%s5323_s7 + $0x18] sm:$0xff] %vm1192_vm3, %v1141_v44  ;;  %v1133_v46 = vadd.f32 %v1132_v15, %v4409_v61 }
 0x5b3   :  { %1194 = vst.msk [vmem:[%s5323_s7 + $0x8] sm:$0xff] %vm1192_vm3, %v1133_v46 }
 0x5b5   :  { %v3808_v50 = vpop.f32.mrf.mxu1 }
 0x5b6   :  { %v1154_v30 = vadd.f32 %v3808_v50, %v4419_v12 }
 0x5b7   :  { %v1145_v27 = vpop.f32.mrf.mxu1 }
 0x5b8   :  { %1199 = vst.msk [vmem:[%s5323_s7 + $0x30] sm:$0xff] %vm1192_vm3, %v1154_v30  ;;  %v1146_v54 = vadd.f32 %v1145_v27, %v4414_v36 }
 0x5b9   :  { %v3809_v31 = vpop.f32.mrf.mxu1 }
 0x5ba   :  { %1197 = vst.msk [vmem:[%s5323_s7 + $0x20] sm:$0xff] %vm1192_vm3, %v1146_v54  ;;  %v1157_v61 = vadd.f32 %v3809_v31, %v4429_v21 }
 0x5bb   :  { %v1148_v55 = vpop.f32.mrf.mxu1 }
 0x5bc   :  { %1200 = vst.msk [vmem:[%s5323_s7 + $0x38] sm:$0xff] %vm1192_vm3, %v1157_v61  ;;  %v1149_v12 = vadd.f32 %v1148_v55, %v4421_v45 }
 0x5bd   :  { %v3812_v34 = vpop.f32.mrf.mxu1 }
 0x5be   :  { %1198 = vst.msk [vmem:[%s5323_s7 + $0x28] sm:$0xff] %vm1192_vm3, %v1149_v12  ;;  %v1170_v36 = vadd.f32 %v3812_v34, %v4436_v35  ;;  %v4118_v34 = vld [vmem:[%s5316_s1] sm:$0x7] }
 0x5bf   :  { %v1161_v5 = vpop.f32.mrf.mxu1 }
 0x5c0   :  { %1203 = vst.msk [vmem:[%s5323_s7 + $0x50] sm:$0xff] %vm1192_vm3, %v1170_v36  ;;  %v1162_v21 = vadd.f32 %v1161_v5, %v4431_v22 }
 0x5c1   :  { %v3813_v32 = vpop.f32.mrf.mxu1 }
 0x5c2   :  { %1201 = vst.msk [vmem:[%s5323_s7 + $0x40] sm:$0xff] %vm1192_vm3, %v1162_v21  ;;  %v1173_v45 = vadd.f32 %v3813_v32, %v4447_v57 }
 0x5c3   :  { %v1164_v39 = vpop.f32.mrf.mxu1 }
 0x5c4   :  { %1204 = vst.msk [vmem:[%s5323_s7 + $0x58] sm:$0xff] %vm1192_vm3, %v1173_v45  ;;  %v1165_v35 = vadd.f32 %v1164_v39, %v4438_v37 }
 0x5c5   :  { %v3816_v9 = vpop.f32.mrf.mxu1 }
 0x5c6   :  { %1202 = vst.msk [vmem:[%s5323_s7 + $0x48] sm:$0xff] %vm1192_vm3, %v1165_v35  ;;  %v1186_v22 = vadd.f32 %v3816_v9, %v4454_v2 }
 0x5c7   :  { %v1177_v38 = vpop.f32.mrf.mxu1 }
 0x5c8   :  { %1207 = vst.msk [vmem:[%s5323_s7 + $0x70] sm:$0xff] %vm1192_vm3, %v1186_v22  ;;  %v1178_v57 = vadd.f32 %v1177_v38, %v4449_v59 }
 0x5c9   :  { %v3817_v62 = vpop.f32.mrf.mxu1 }
 0x5ca   :  { %1205 = vst.msk [vmem:[%s5323_s7 + $0x60] sm:$0xff] %vm1192_vm3, %v1178_v57  ;;  %v1189_v37 = vadd.f32 %v3817_v62, %v4475_v18 }
 0x5cb   :  { %v1180_v63 = vpop.f32.mrf.mxu1 }
 0x5cc   :  { %1208 = vst.msk [vmem:[%s5323_s7 + $0x78] sm:$0xff] %vm1192_vm3, %v1189_v37  ;;  %v1181_v2 = vadd.f32 %v1180_v63, %v4456_v4 }
 0x5cd   :  { %v3846_v1 = vpop.f32.mrf.mxu1 }
 0x5ce   :  { %1206 = vst.msk [vmem:[%s5323_s7 + $0x68] sm:$0xff] %vm1192_vm3, %v1181_v2  ;;  %v1510_v13 = vmax.f32 %v3846_v1, 0.0 }
 0x5cf   :  { %v1445_v59 = vpop.f32.mrf.mxu1 }
 0x5d0   :  { %v1508_v42 = vmax.f32 %v1445_v59, 0.0 }
 0x5d1   :  { %v3847_v6 = vpop.f32.mrf.mxu1 }
 0x5d2   :  { %v1511_v29 = vmax.f32 %v3847_v6, 0.0 }
 0x5d3   :  { %v1448_v8 = vpop.f32.mrf.mxu1 }
 0x5d4   :  { %v1509_v18 = vmax.f32 %v1448_v8, 0.0  ;;  %v1525_v43 = vpack.c.bf16 %v1511_v29, %v1510_v13 }
 0x5d5   :  { %v3850_v20 = vpop.f32.mrf.mxu1 }
 0x5d6   :  { %v1524_v23 = vpack.c.bf16 %v1509_v18, %v1508_v42  ;;  %v1514_v33 = vmax.f32 %v3850_v20, 0.0  ;;  %v1653_v20 = vunpack.c.l.bf16 %v4627_v25 }
 0x5d7   :  { %v1461_v24 = vpop.f32.mrf.mxu1 }
 0x5d8   :  { %3868 = vmatprep.mubr.msk.bf16.mxu0 %vm274_vm2, %v1524_v23  ;;  %v1512_v56 = vmax.f32 %v1461_v24, 0.0 }
 0x5d9   :  { %v3851_v4 = vpop.f32.mrf.mxu1  ;;  %3869 = vmatmul.mubr.msk.bf16.vlgmr.msra.gmra.mxu0 %vm274_vm2, %v1525_v43  ;;  %v1654_v43 = vunpack.c.h.bf16 %v4627_v25 }
 0x5da   :  { %3909 = vmatpush3.bf16.msra.mxu0 %v4461_v58  ;;  %v1515_v7 = vmax.f32 %v3851_v4, 0.0 }
 0x5db   :  { %v1464_v26 = vpop.f32.mrf.mxu1  ;;  %3910 = vmatprep.subr.bf16.mxu0 %v4468_v11 }
 0x5dc   :  { %v1513_v60 = vmax.f32 %v1464_v26, 0.0  ;;  %v1527_v15 = vpack.c.bf16 %v1515_v7, %v1514_v33  ;;  %v1655_v7 = vunpack.c.l.bf16 %v4625_v14 }
 0x5dd   :  { %v3854_v47 = vpop.f32.mrf.mxu1 }
 0x5de   :  { %v1526_v44 = vpack.c.bf16 %v1513_v60, %v1512_v56  ;;  %3911 = vmatpush3.bf16.msra.mxu0 %v4468_v11  ;;  %v1518_v31 = vmax.f32 %v3854_v47, 0.0  ;;  %v1656_v47 = vunpack.c.h.bf16 %v4625_v14 }
 0x5df   :  { %v1477_v46 = vpop.f32.mrf.mxu1  ;;  %3912 = vmatprep.subr.bf16.mxu0 %v4481_v19 }
 0x5e0   :  { %3872 = vmatprep.mubr.msk.bf16.mxu0 %vm274_vm2, %v1526_v44  ;;  %v1516_v27 = vmax.f32 %v1477_v46, 0.0  ;;  %v1657_v46 = vunpack.c.l.bf16 %v4635_v48 }
 0x5e1   :  { %v3855_v50 = vpop.f32.mrf.mxu1  ;;  %3873 = vmatmul.mubr.msk.bf16.gmra.mxu0 %vm274_vm2, %v1527_v15 }
 0x5e2   :  { %3913 = vmatpush3.bf16.msra.mxu0 %v4481_v19  ;;  %v1519_v58 = vmax.f32 %v3855_v50, 0.0 }
 0x5e3   :  { %v1480_v30 = vpop.f32.mrf.mxu1  ;;  %3914 = vmatprep.subr.bf16.mxu0 %v4500_v51 }
 0x5e4   :  { %v1517_v54 = vmax.f32 %v1480_v30, 0.0  ;;  %v1529_v55 = vpack.c.bf16 %v1519_v58, %v1518_v31 }
 0x5e5   :  { %v3858_v61 = vpop.f32.mrf.mxu1 }
 0x5e6   :  { %v1528_v11 = vpack.c.bf16 %v1517_v54, %v1516_v27  ;;  %3915 = vmatpush3.bf16.msra.mxu0 %v4500_v51  ;;  %v1522_v45 = vmax.f32 %v3858_v61, 0.0  ;;  %v1658_v54 = vunpack.c.h.bf16 %v4635_v48  ;;  %v1659_v61 = vunpack.c.l.bf16 %v4631_v40 }
 0x5e7   :  { %v1493_v12 = vpop.f32.mrf.mxu1  ;;  %4096 = vmatprep.subr.msk.bf16.mxu0 %vm117_vm0, %v4118_v34 }
 0x5e8   :  { %3876 = vmatprep.mubr.msk.bf16.mxu0 %vm274_vm2, %v1528_v11  ;;  %v1520_v21 = vmax.f32 %v1493_v12, 0.0 }
 0x5e9   :  { %v3859_v19 = vpop.f32.mrf.mxu1  ;;  %3877 = vmatmul.mubr.msk.bf16.gmra.mxu0 %vm274_vm2, %v1529_v55 }
 0x5ea   :  { %v1523_v36 = vmax.f32 %v3859_v19, 0.0 }
 0x5eb   :  { %v1496_v5 = vpop.f32.mrf.mxu1 }
 0x5ec   :  { %v1521_v32 = vmax.f32 %v1496_v5, 0.0  ;;  %v1531_v51 = vpack.c.bf16 %v1523_v36, %v1522_v45  ;;  %v1660_v36 = vunpack.c.h.bf16 %v4631_v40 }
 0x5ee   :  { %v1530_v39 = vpack.c.bf16 %v1521_v32, %v1520_v21  ;;  %v1661_v32 = vunpack.c.l.bf16 %v4645_v41 }
 0x5f0   :  { %3880 = vmatprep.mubr.msk.bf16.mxu0 %vm274_vm2, %v1530_v39 }
 0x5f1   :  { %3881 = vmatmul.mubr.msk.bf16.gmra.mxu0 %vm274_vm2, %v1531_v51 }
 0x699   :  { %v3870_v35 = vpop.f32.mrf.mxu0 }
 0x69b   :  { %v1590_v9 = vpop.f32.mrf.mxu0 }
 0x69c   :  { %1685 = vrot.lane.b32.xlu0 %v1590_v9, %s4139_s28  ;;  %v1662_v9 = vunpack.c.h.bf16 %v4645_v41  ;;  %v1664_v41 = vunpack.c.h.bf16 %v4641_v28 }
 0x69d   :  { %v3871_v22 = vpop.f32.mrf.mxu0 }
 0x69f   :  { %v1593_v38 = vpop.f32.mrf.mxu0 }
 0x6a0   :  { %1689 = vrot.lane.b32.xlu0 %v3870_v35, %s4139_s28  ;;  %1687 = vrot.lane.b32.xlu1 %v1593_v38, %s4139_s28  ;;  %v1385_v38 = vpack.c.bf16 %v4655_v17, %v4648_v10 }
 0x6a1   :  { %v3874_v57 = vpop.f32.mrf.mxu0 }
 0x6a2   :  { %v1665_v10 = vunpack.c.l.bf16 %v1385_v38 }
 0x6a3   :  { %v1606_v62 = vpop.f32.mrf.mxu0 }
 0x6a4   :  { %1691 = vrot.lane.b32.xlu1 %v3871_v22, %s4139_s28  ;;  %1693 = vrot.lane.b32.xlu0 %v1606_v62, %s4139_s28 }
 0x6a5   :  { %v3875_v37 = vpop.f32.mrf.mxu0 }
 0x6a7   :  { %v1609_v63 = vpop.f32.mrf.mxu0 }
 0x6a8   :  { %1697 = vrot.lane.b32.xlu0 %v3874_v57, %s4139_s28  ;;  %1695 = vrot.lane.b32.xlu1 %v1609_v63, %s4139_s28  ;;  %v1663_v57 = vunpack.c.l.bf16 %v4641_v28  ;;  %v1667_v28 = vunpack.c.l.bf16 %v4653_v49 }
 0x6a9   :  { %v3878_v2 = vpop.f32.mrf.mxu0 }
 0x6ab   :  { %v1622_v1 = vpop.f32.mrf.mxu0 }
 0x6ac   :  { %1699 = vrot.lane.b32.xlu1 %v3875_v37, %s4139_s28  ;;  %1701 = vrot.lane.b32.xlu0 %v1622_v1, %s4139_s28 }
 0x6ad   :  { %v3879_v59 = vpop.f32.mrf.mxu0 }
 0x6af   :  { %v1625_v6 = vpop.f32.mrf.mxu0 }
 0x6b0   :  { %1705 = vrot.lane.b32.xlu0 %v3878_v2, %s4139_s28  ;;  %1703 = vrot.lane.b32.xlu1 %v1625_v6, %s4139_s28 }
 0x6b1   :  { %v3882_v29 = vpop.f32.mrf.mxu0 }
 0x6b3   :  { %v1638_v8 = vpop.f32.mrf.mxu0 }
 0x6b4   :  { %1707 = vrot.lane.b32.xlu1 %v3879_v59, %s4139_s28  ;;  %1709 = vrot.lane.b32.xlu0 %v1638_v8, %s4139_s28 }
 0x6b5   :  { %v3883_v42 = vpop.f32.mrf.mxu0 }
 0x6b7   :  { %v1641_v18 = vpop.f32.mrf.mxu0 }
 0x6b8   :  { %1713 = vrot.lane.b32.xlu0 %v3882_v29, %s4139_s28  ;;  %1711 = vrot.lane.b32.xlu1 %v1641_v18, %s4139_s28 }
 0x6bc   :  { %1715 = vrot.lane.b32.xlu1 %v3883_v42, %s4139_s28 }
 0x70e   :  { %v4776_v13 = vpop.permute.xlu0 %1685 }
 0x70f   :  { %v1733_v23 = vadd.f32 %v4776_v13, %v1653_v20  ;;  %v1666_v20 = vunpack.c.h.bf16 %v1385_v38 }
 0x711   :  { %v1749_v56 = vmax.f32 %v1733_v23, 0.0 }
 0x712   :  { %v4781_v24 = vpop.permute.xlu0 %1689  ;;  %v4783_v4 = vpop.permute.xlu1 %1687 }
 0x713   :  { %v1734_v26 = vadd.f32 %v4783_v4, %v1654_v43  ;;  %v1735_v60 = vadd.f32 %v4781_v24, %v1655_v7 }
 0x715   :  { %v1750_v33 = vmax.f32 %v1734_v26, 0.0  ;;  %v1751_v58 = vmax.f32 %v1735_v60, 0.0 }
 0x716   :  { %v4789_v44 = vpop.permute.xlu1 %1691  ;;  %v4791_v15 = vpop.permute.xlu0 %1693 }
 0x717   :  { %v1736_v25 = vadd.f32 %v4789_v44, %v1656_v47  ;;  %v1765_v50 = vpack.c.bf16 %v1750_v33, %v1749_v56  ;;  %v1737_v27 = vadd.f32 %v4791_v15, %v1657_v46  ;;  %v1668_v47 = vunpack.c.h.bf16 %v4653_v49 }
 0x719   :  { %v1752_v30 = vmax.f32 %v1736_v25, 0.0  ;;  %1781 = vrot.lane.b32.xlu0 %v1765_v50, %s4139_s28  ;;  %v1753_v12 = vmax.f32 %v1737_v27, 0.0 }
 0x71a   :  { %v4798_v31 = vpop.permute.xlu0 %1697  ;;  %v4800_v14 = vpop.permute.xlu1 %1695 }
 0x71b   :  { %v1738_v11 = vadd.f32 %v4800_v14, %v1658_v54  ;;  %v1766_v55 = vpack.c.bf16 %v1752_v30, %v1751_v58  ;;  %v1739_v34 = vadd.f32 %v4798_v31, %v1659_v61 }
 0x71d   :  { %v1754_v19 = vmax.f32 %v1738_v11, 0.0  ;;  %1783 = vrot.lane.b32.xlu1 %v1766_v55, %s4139_s28  ;;  %v1755_v39 = vmax.f32 %v1739_v34, 0.0 }
 0x71e   :  { %v4807_v5 = vpop.permute.xlu1 %1699  ;;  %v4809_v48 = vpop.permute.xlu0 %1701 }
 0x71f   :  { %v1740_v21 = vadd.f32 %v4807_v5, %v1660_v36  ;;  %v1767_v45 = vpack.c.bf16 %v1754_v19, %v1753_v12  ;;  %v1741_v35 = vadd.f32 %v4809_v48, %v1661_v32 }
 0x721   :  { %v1756_v51 = vmax.f32 %v1740_v21, 0.0  ;;  %1785 = vrot.lane.b32.xlu0 %v1767_v45, %s4139_s28  ;;  %v1757_v63 = vmax.f32 %v1741_v35, 0.0 }
 0x722   :  { %v4816_v22 = vpop.permute.xlu0 %1705  ;;  %v4818_v40 = vpop.permute.xlu1 %1703 }
 0x723   :  { %v1742_v62 = vadd.f32 %v4818_v40, %v1662_v9  ;;  %v1768_v37 = vpack.c.bf16 %v1756_v51, %v1755_v39  ;;  %v1743_v2 = vadd.f32 %v4816_v22, %v1663_v57 }
 0x725   :  { %v1758_v1 = vmax.f32 %v1742_v62, 0.0  ;;  %1787 = vrot.lane.b32.xlu1 %v1768_v37, %s4139_s28  ;;  %v1759_v8 = vmax.f32 %v1743_v2, 0.0 }
 0x726   :  { %v4827_v59 = vpop.permute.xlu1 %1707  ;;  %v4829_v6 = vpop.permute.xlu0 %1709 }
 0x727   :  { %v1744_v29 = vadd.f32 %v4827_v59, %v1664_v41  ;;  %v1769_v17 = vpack.c.bf16 %v1758_v1, %v1757_v63  ;;  %v1745_v18 = vadd.f32 %v4829_v6, %v1665_v10  ;;  %v4120_v63 = vld [vmem:[%s5319_s3 + $0x18] sm:$0xff]  }
 0x729   :  { %v1760_v42 = vmax.f32 %v1744_v29, 0.0  ;;  %1789 = vrot.lane.b32.xlu0 %v1769_v17, %s4139_s28  ;;  %v1761_v56 = vmax.f32 %v1745_v18, 0.0 }
 0x72a   :  { %v4834_v23 = vpop.permute.xlu0 %1713  ;;  %v4836_v43 = vpop.permute.xlu1 %1711 }
 0x72b   :  { %v1746_v7 = vadd.f32 %v4836_v43, %v1666_v20  ;;  %v1770_v26 = vpack.c.bf16 %v1760_v42, %v1759_v8  ;;  %v1747_v60 = vadd.f32 %v4834_v23, %v1667_v28 }
 0x72d   :  { %v1762_v33 = vmax.f32 %v1746_v7, 0.0  ;;  %1791 = vrot.lane.b32.xlu1 %v1770_v26, %s4139_s28  ;;  %v1763_v58 = vmax.f32 %v1747_v60, 0.0 }
 0x72e   :  { %v4843_v25 = vpop.permute.xlu1 %1715 }
 0x72f   :  { %v1748_v46 = vadd.f32 %v4843_v25, %v1668_v47  ;;  %v1771_v50 = vpack.c.bf16 %v1762_v33, %v1761_v56 }
 0x731   :  { %v1764_v30 = vmax.f32 %v1748_v46, 0.0  ;;  %1793 = vrot.lane.b32.xlu0 %v1771_v50, %s4139_s28 }
 0x733   :  { %v1772_v27 = vpack.c.bf16 %v1764_v30, %v1763_v58  ;;  %v3393_v58 = vld [vmem:[%s5317_s0 + $0x100] sm:$0xff]  ;;  %v3394_v30 = vld [vmem:[%s5317_s0 + $0x108] sm:$0xff] }
 0x735   :  { %1795 = vrot.lane.b32.xlu1 %v1772_v27, %s4139_s28 }
 0x78b   :  { %v1782_v54 = vpop.permute.xlu0 %1781 }
 0x78c   :  { %3892 = vmatprep.mubr.msk.bf16.mxu1 %vm274_vm2, %v1782_v54 }
 0x78f   :  { %v1784_v61 = vpop.permute.xlu1 %1783 }
 0x790   :  { %3893 = vmatmul.mubr.msk.bf16.vlgmr.msra.gmra.mxu1 %vm274_vm2, %v1784_v61 }
 0x791   :  { %3933 = vmatpush3.bf16.msra.mxu1 %v4509_v52  ;;  %v4863_v52 = vld [vmem:[%s5318_s2 + $0x18] sm:$0xff]  }
 0x792   :  { %3934 = vmatprep.subr.bf16.mxu1 %v4514_v53 }
 0x793   :  { %v1786_v49 = vpop.permute.xlu0 %1785 }
 0x794   :  { %3896 = vmatprep.mubr.msk.bf16.mxu1 %vm274_vm2, %v1786_v49 }
 0x795   :  { %3935 = vmatpush3.bf16.msra.mxu1 %v4514_v53 }
 0x796   :  { %3936 = vmatprep.subr.bf16.mxu1 %v4522_v0 }
 0x797   :  { %v1788_v11 = vpop.permute.xlu1 %1787 }
 0x798   :  { %3897 = vmatmul.mubr.msk.bf16.gmra.mxu1 %vm274_vm2, %v1788_v11  ;;  %v2242_v11 = vpack.c.bf16 %v3394_v30, %v3393_v58  ;;  %v4125_v30 = vld [vmem:[%s5318_s2 + $0x10] sm:$0xff]  }
 0x799   :  { %3937 = vmatpush3.bf16.msra.mxu1 %v4522_v0 }
 0x79a   :  { %3938 = vmatprep.subr.bf16.mxu1 %v4604_v16 }
 0x79b   :  { %v1790_v55 = vpop.permute.xlu0 %1789 }
 0x79c   :  { %3900 = vmatprep.mubr.msk.bf16.mxu1 %vm274_vm2, %v1790_v55 }
 0x79d   :  { %3939 = vmatpush3.bf16.msra.mxu1 %v4604_v16 }
 0x79e   :  { %3974 = vmatprep.subr.bf16.mxu1 %v4863_v52 }
 0x79f   :  { %v1792_v53 = vpop.permute.xlu1 %1791 }
 0x7a0   :  { %3901 = vmatmul.mubr.msk.bf16.gmra.mxu1 %vm274_vm2, %v1792_v53  ;;  %v3395_v53 = vld [vmem:[%s5317_s0 + $0x110] sm:$0xff] }
 0x7a3   :  { %v1794_v12 = vpop.permute.xlu0 %1793 }
 0x7a4   :  { %3904 = vmatprep.mubr.msk.bf16.mxu1 %vm274_vm2, %v1794_v12  ;;  %v3396_v12 = vld [vmem:[%s5317_s0 + $0x118] sm:$0xff] }
 0x7a7   :  { %v1796_v0 = vpop.permute.xlu1 %1795 }
 0x7a8   :  { %3905 = vmatmul.mubr.msk.bf16.gmra.mxu1 %vm274_vm2, %v1796_v0  ;;  %v3397_v0 = vld [vmem:[%s5317_s0 + $0x120] sm:$0xff] }
 0x850   :  { %v3894_v34 = vpop.f32.mrf.mxu1 }
 0x851   :  { %v1920_v39 = vmax.f32 %v3894_v34, 0.0  ;;  %v3398_v34 = vld [vmem:[%s5317_s0 + $0x128] sm:$0xff] }
 0x852   :  { %v1855_v19 = vpop.f32.mrf.mxu1 }
 0x853   :  { %v1918_v32 = vmax.f32 %v1855_v19, 0.0  ;;  %v2243_v19 = vpack.c.bf16 %v3396_v12, %v3395_v53  ;;  %v4126_v12 = vld [vmem:[%s5318_s2 + $0x8] sm:$0xff]  }
 0x854   :  { %v3895_v36 = vpop.f32.mrf.mxu1 }
 0x855   :  { %v1921_v16 = vmax.f32 %v3895_v36, 0.0  ;;  %v2244_v36 = vpack.c.bf16 %v3398_v34, %v3397_v0 }
 0x856   :  { %v1858_v21 = vpop.f32.mrf.mxu1 }
 0x857   :  { %v1919_v45 = vmax.f32 %v1858_v21, 0.0  ;;  %v1935_v9 = vpack.c.bf16 %v1921_v16, %v1920_v39  ;;  %v3399_v16 = vld [vmem:[%s5317_s0 + $0x130] sm:$0xff]  ;;  %v3400_v21 = vld [vmem:[%s5317_s0 + $0x138] sm:$0xff] }
 0x858   :  { %v3898_v51 = vpop.f32.mrf.mxu1  ;;  %v4121_v39 = vld [vmem:[%s5319_s3 + $0x10] sm:$0xff]  }
 0x859   :  { %v1934_v35 = vpack.c.bf16 %v1919_v45, %v1918_v32  ;;  %v1924_v41 = vmax.f32 %v3898_v51, 0.0  ;;  %v3401_v32 = vld [vmem:[%s5317_s0 + $0x140] sm:$0xff]  ;;  %v3402_v45 = vld [vmem:[%s5317_s0 + $0x148] sm:$0xff]  ;;  %v2245_v51 = vpack.c.bf16 %v3400_v21, %v3399_v16 }
 0x85a   :  { %v1871_v38 = vpop.f32.mrf.mxu1 }
 0x85b   :  { %3916 = vmatprep.mubr.msk.bf16.mxu0 %vm274_vm2, %v1934_v35  ;;  %v1922_v2 = vmax.f32 %v1871_v38, 0.0  ;;  %v2246_v35 = vpack.c.bf16 %v3402_v45, %v3401_v32  ;;  %v3403_v38 = vld [vmem:[%s5317_s0 + $0x150] sm:$0xff] }
 0x85c   :  { %v3899_v57 = vpop.f32.mrf.mxu1  ;;  %3917 = vmatmul.mubr.msk.bf16.vlgmr.msra.gmra.mxu0 %vm274_vm2, %v1935_v9  ;;  %v4122_v9 = vld [vmem:[%s5319_s3 + $0x8] sm:$0xff]  }
 0x85d   :  { %3957 = vmatpush3.bf16.msra.mxu0 %v4195_v3  ;;  %v1925_v62 = vmax.f32 %v3899_v57, 0.0  ;;  %v3404_v57 = vld [vmem:[%s5317_s0 + $0x158] sm:$0xff] }
 0x85e   :  { %v1874_v37 = vpop.f32.mrf.mxu1  ;;  %3998 = vmatprep.subr.bf16.mxu0 %v4120_v63 }
 0x85f   :  { %v1923_v1 = vmax.f32 %v1874_v37, 0.0  ;;  %v1937_v17 = vpack.c.bf16 %v1925_v62, %v1924_v41  ;;  %v3405_v62 = vld [vmem:[%s5317_s0 + $0x160] sm:$0xff]  ;;  %v3406_v37 = vld [vmem:[%s5317_s0 + $0x168] sm:$0xff]  ;;  %v4940_v41 = vld [vmem:[%s5321_s5 + $0x18] sm:$0xff]  }
 0x860   :  { %v3902_v29 = vpop.f32.mrf.mxu1 }
 0x861   :  { %v1936_v10 = vpack.c.bf16 %v1923_v1, %v1922_v2  ;;  %v1928_v7 = vmax.f32 %v3902_v29, 0.0  ;;  %v2247_v2 = vpack.c.bf16 %v3404_v57, %v3403_v38  ;;  %v2248_v1 = vpack.c.bf16 %v3406_v37, %v3405_v62  ;;  %v3407_v29 = vld [vmem:[%s5317_s0 + $0x170] sm:$0xff] }
 0x862   :  { %v1887_v8 = vpop.f32.mrf.mxu1 }
 0x863   :  { %3920 = vmatprep.mubr.msk.bf16.mxu0 %vm274_vm2, %v1936_v10  ;;  %v1926_v20 = vmax.f32 %v1887_v8, 0.0  ;;  %v3408_v10 = vld [vmem:[%s5317_s0 + $0x178] sm:$0xff] }
 0x864   :  { %v3903_v42 = vpop.f32.mrf.mxu1  ;;  %3921 = vmatmul.mubr.msk.bf16.gmra.mxu0 %vm274_vm2, %v1937_v17  ;;  %v2249_v17 = vpack.c.bf16 %v3408_v10, %v3407_v29 }
 0x865   :  { %v1929_v3 = vmax.f32 %v3903_v42, 0.0 }
 0x866   :  { %v1890_v18 = vpop.f32.mrf.mxu1 }
 0x867   :  { %v1927_v28 = vmax.f32 %v1890_v18, 0.0  ;;  %v1939_v60 = vpack.c.bf16 %v1929_v3, %v1928_v7 }
 0x868   :  { %v3906_v26 = vpop.f32.mrf.mxu1 }
 0x869   :  { %v1938_v56 = vpack.c.bf16 %v1927_v28, %v1926_v20  ;;  %v1932_v61 = vmax.f32 %v3906_v26, 0.0 }
 0x86a   :  { %v1903_v33 = vpop.f32.mrf.mxu1 }
 0x86b   :  { %3924 = vmatprep.mubr.msk.bf16.mxu0 %vm274_vm2, %v1938_v56  ;;  %v1930_v27 = vmax.f32 %v1903_v33, 0.0 }
 0x86c   :  { %v3907_v47 = vpop.f32.mrf.mxu1  ;;  %3925 = vmatmul.mubr.msk.bf16.gmra.mxu0 %vm274_vm2, %v1939_v60 }
 0x86d   :  { %v1933_v46 = vmax.f32 %v3907_v47, 0.0 }
 0x86e   :  { %v1906_v50 = vpop.f32.mrf.mxu1 }
 0x86f   :  { %v1931_v54 = vmax.f32 %v1906_v50, 0.0  ;;  %v1941_v55 = vpack.c.bf16 %v1933_v46, %v1932_v61 }
 0x871   :  { %v1940_v49 = vpack.c.bf16 %v1931_v54, %v1930_v27 }
 0x873   :  { %3928 = vmatprep.mubr.msk.bf16.mxu0 %vm274_vm2, %v1940_v49 }
 0x874   :  { %3929 = vmatmul.mubr.msk.bf16.gmra.mxu0 %vm274_vm2, %v1941_v55 }
 0x875   :  { %3958 = vmatprep.mubr.msk.bf16.mxu0 %vm92_vm1, %v2242_v11 }
 0x87c   :  { %3959 = vmatmul.mubr.msk.bf16.vlgmr.msra.gmra.mxu0 %vm92_vm1, %v2243_v19  ;;  %v4127_v19 = vld [vmem:[%s5318_s2] sm:$0xff]  }
 0x87d   :  { %3962 = vmatprep.mubr.msk.bf16.mxu0 %vm92_vm1, %v2244_v36  ;;  %3999 = vmatpush3.bf16.msra.mxu0 %v4120_v63  ;;  %v4123_v63 = vld [vmem:[%s5319_s3] sm:$0xff]  }
 0x87e   :  { %4000 = vmatprep.subr.bf16.mxu0 %v4121_v39 }
 0x881   :  { %4001 = vmatpush3.bf16.msra.mxu0 %v4121_v39 }
 0x882   :  { %4002 = vmatprep.subr.bf16.mxu0 %v4122_v9 }
 0x884   :  { %3963 = vmatmul.mubr.msk.bf16.gmra.mxu0 %vm92_vm1, %v2245_v51 }
 0x885   :  { %3966 = vmatprep.mubr.msk.bf16.mxu0 %vm92_vm1, %v2246_v35  ;;  %4003 = vmatpush3.bf16.msra.mxu0 %v4122_v9  ;;  %v4128_v35 = vld [vmem:[%s5320_s4 + $0x18] sm:$0xff]  }
 0x886   :  { %4004 = vmatprep.subr.bf16.mxu0 %v4123_v63 }
 0x889   :  { %4005 = vmatpush3.bf16.msra.mxu0 %v4123_v63 }
 0x88a   :  { %4046 = vmatprep.subr.bf16.mxu0 %v4940_v41 }
 0x88c   :  { %3967 = vmatmul.mubr.msk.bf16.gmra.mxu0 %vm92_vm1, %v2247_v2 }
 0x88d   :  { %3970 = vmatprep.mubr.msk.bf16.mxu0 %vm92_vm1, %v2248_v1 }
 0x894   :  { %3971 = vmatmul.mubr.msk.bf16.gmra.mxu0 %vm92_vm1, %v2249_v17 }
 0x91c   :  { %v3918_v8 = vpop.f32.mrf.mxu0 }
 0x91d   :  { %v2065_v26 = vmax.f32 %v3918_v8, 0.0 }
 0x91e   :  { %v2000_v42 = vpop.f32.mrf.mxu0 }
 0x91f   :  { %v2063_v28 = vmax.f32 %v2000_v42, 0.0 }
 0x920   :  { %v3919_v3 = vpop.f32.mrf.mxu0 }
 0x921   :  { %v2066_v18 = vmax.f32 %v3919_v3, 0.0 }
 0x922   :  { %v2003_v20 = vpop.f32.mrf.mxu0 }
 0x923   :  { %v2064_v7 = vmax.f32 %v2003_v20, 0.0  ;;  %v2080_v33 = vpack.c.bf16 %v2066_v18, %v2065_v26 }
 0x924   :  { %v3922_v56 = vpop.f32.mrf.mxu0 }
 0x925   :  { %v2079_v60 = vpack.c.bf16 %v2064_v7, %v2063_v28  ;;  %v2069_v61 = vmax.f32 %v3922_v56, 0.0 }
 0x926   :  { %v2016_v47 = vpop.f32.mrf.mxu0 }
 0x927   :  { %3940 = vmatprep.mubr.msk.bf16.mxu1 %vm274_vm2, %v2079_v60  ;;  %v2067_v27 = vmax.f32 %v2016_v47, 0.0 }
 0x928   :  { %v3923_v46 = vpop.f32.mrf.mxu0  ;;  %3941 = vmatmul.mubr.msk.bf16.vlgmr.msra.gmra.mxu1 %vm274_vm2, %v2080_v33 }
 0x929   :  { %3975 = vmatpush3.bf16.msra.mxu1 %v4863_v52  ;;  %v2070_v50 = vmax.f32 %v3923_v46, 0.0 }
 0x92a   :  { %v2019_v58 = vpop.f32.mrf.mxu0  ;;  %3976 = vmatprep.subr.bf16.mxu1 %v4125_v30 }
 0x92b   :  { %v2068_v54 = vmax.f32 %v2019_v58, 0.0  ;;  %v2082_v55 = vpack.c.bf16 %v2070_v50, %v2069_v61 }
 0x92c   :  { %v3926_v49 = vpop.f32.mrf.mxu0 }
 0x92d   :  { %v2081_v11 = vpack.c.bf16 %v2068_v54, %v2067_v27  ;;  %3977 = vmatpush3.bf16.msra.mxu1 %v4125_v30  ;;  %v2073_v21 = vmax.f32 %v3926_v49, 0.0  ;;  %v4129_v30 = vld [vmem:[%s5320_s4 + $0x10] sm:$0xff]  }
 0x92e   :  { %v2032_v53 = vpop.f32.mrf.mxu0  ;;  %3978 = vmatprep.subr.bf16.mxu1 %v4126_v12 }
 0x92f   :  { %3944 = vmatprep.mubr.msk.bf16.mxu1 %vm274_vm2, %v2081_v11  ;;  %v2071_v36 = vmax.f32 %v2032_v53, 0.0 }
 0x930   :  { %v3927_v52 = vpop.f32.mrf.mxu0  ;;  %3945 = vmatmul.mubr.msk.bf16.gmra.mxu1 %vm274_vm2, %v2082_v55 }
 0x931   :  { %3979 = vmatpush3.bf16.msra.mxu1 %v4126_v12  ;;  %v2074_v0 = vmax.f32 %v3927_v52, 0.0  ;;  %v4130_v52 = vld [vmem:[%s5320_s4 + $0x8] sm:$0xff]  }
 0x932   :  { %v2035_v34 = vpop.f32.mrf.mxu0  ;;  %3980 = vmatprep.subr.bf16.mxu1 %v4127_v19 }
 0x933   :  { %v2072_v16 = vmax.f32 %v2035_v34, 0.0  ;;  %v2084_v39 = vpack.c.bf16 %v2074_v0, %v2073_v21 }
 0x934   :  { %v3930_v32 = vpop.f32.mrf.mxu0 }
 0x935   :  { %v2083_v45 = vpack.c.bf16 %v2072_v16, %v2071_v36  ;;  %3981 = vmatpush3.bf16.msra.mxu1 %v4127_v19  ;;  %v2077_v63 = vmax.f32 %v3930_v32, 0.0  ;;  %v4131_v16 = vld [vmem:[%s5320_s4] sm:$0xff]  }
 0x936   :  { %v2048_v51 = vpop.f32.mrf.mxu0  ;;  %4022 = vmatprep.subr.bf16.mxu1 %v4128_v35 }
 0x937   :  { %3948 = vmatprep.mubr.msk.bf16.mxu1 %vm274_vm2, %v2083_v45  ;;  %v2075_v62 = vmax.f32 %v2048_v51, 0.0 }
 0x938   :  { %v3931_v9 = vpop.f32.mrf.mxu0  ;;  %3949 = vmatmul.mubr.msk.bf16.gmra.mxu1 %vm274_vm2, %v2084_v39 }
 0x939   :  { %v2078_v38 = vmax.f32 %v3931_v9, 0.0 }
 0x93a   :  { %v2051_v57 = vpop.f32.mrf.mxu0 }
 0x93b   :  { %v2076_v37 = vmax.f32 %v2051_v57, 0.0  ;;  %v2086_v29 = vpack.c.bf16 %v2078_v38, %v2077_v63  ;;  %v5003_v57 = vld [vmem:[%s5322_s6 + $0x18] sm:$0xff]  }
 0x93c   :  { %v3960_v2 = vpop.f32.mrf.mxu0 }
 0x93d   :  { %v2085_v1 = vpack.c.bf16 %v2076_v37, %v2075_v62  ;;  %v2373_v7 = vmax.f32 %v3960_v2, 0.0 }
 0x93e   :  { %v2308_v10 = vpop.f32.mrf.mxu0 }
 0x93f   :  { %3952 = vmatprep.mubr.msk.bf16.mxu1 %vm274_vm2, %v2085_v1  ;;  %v2371_v18 = vmax.f32 %v2308_v10, 0.0 }
 0x940   :  { %3953 = vmatmul.mubr.msk.bf16.gmra.mxu1 %vm274_vm2, %v2086_v29  ;;  %v3961_v17 = vpop.f32.mrf.mxu0 }
 0x941   :  { %v4973_v8 = vpack.c.bf16 %v3961_v17, %v3960_v2  ;;  %v2374_v42 = vmax.f32 %v3961_v17, 0.0 }
 0x942   :  { %v2311_v3 = vpop.f32.mrf.mxu0 }
 0x943   :  { %v2372_v20 = vmax.f32 %v2311_v3, 0.0  ;;  %v4975_v28 = vpack.c.bf16 %v2311_v3, %v2308_v10  ;;  %v2388_v60 = vpack.c.bf16 %v2374_v42, %v2373_v7 }
 0x944   :  { %v3964_v26 = vpop.f32.mrf.mxu0 }
 0x945   :  { %v2387_v56 = vpack.c.bf16 %v2372_v20, %v2371_v18  ;;  %v2377_v49 = vmax.f32 %v3964_v26, 0.0 }
 0x946   :  { %v2324_v33 = vpop.f32.mrf.mxu0 }
 0x947   :  { %3982 = vmatprep.mubr.msk.bf16.mxu1 %vm274_vm2, %v2387_v56  ;;  %v2375_v27 = vmax.f32 %v2324_v33, 0.0 }
 0x948   :  { %v3965_v47 = vpop.f32.mrf.mxu0  ;;  %3983 = vmatmul.mubr.msk.bf16.vlgmr.msra.gmra.mxu1 %vm274_vm2, %v2388_v60 }
 0x949   :  { %v4979_v46 = vpack.c.bf16 %v3965_v47, %v3964_v26  ;;  %4023 = vmatpush3.bf16.msra.mxu1 %v4128_v35  ;;  %v2378_v50 = vmax.f32 %v3965_v47, 0.0 }
 0x94a   :  { %v2327_v58 = vpop.f32.mrf.mxu0  ;;  %4024 = vmatprep.subr.bf16.mxu1 %v4129_v30 }
 0x94b   :  { %v2376_v54 = vmax.f32 %v2327_v58, 0.0  ;;  %v4984_v61 = vpack.c.bf16 %v2327_v58, %v2324_v33  ;;  %v2390_v53 = vpack.c.bf16 %v2378_v50, %v2377_v49 }
 0x94c   :  { %v3968_v11 = vpop.f32.mrf.mxu0 }
 0x94d   :  { %v2389_v55 = vpack.c.bf16 %v2376_v54, %v2375_v27  ;;  %4025 = vmatpush3.bf16.msra.mxu1 %v4129_v30  ;;  %v2381_v39 = vmax.f32 %v3968_v11, 0.0 }
 0x94e   :  { %v2340_v12 = vpop.f32.mrf.mxu0  ;;  %4026 = vmatprep.subr.bf16.mxu1 %v4130_v52 }
 0x94f   :  { %3986 = vmatprep.mubr.msk.bf16.mxu1 %vm274_vm2, %v2389_v55  ;;  %v2379_v21 = vmax.f32 %v2340_v12, 0.0 }
 0x950   :  { %v3969_v0 = vpop.f32.mrf.mxu0  ;;  %3987 = vmatmul.mubr.msk.bf16.gmra.mxu1 %vm274_vm2, %v2390_v53 }
 0x951   :  { %v4991_v34 = vpack.c.bf16 %v3969_v0, %v3968_v11  ;;  %4027 = vmatpush3.bf16.msra.mxu1 %v4130_v52  ;;  %v2382_v19 = vmax.f32 %v3969_v0, 0.0 }
 0x952   :  { %v2343_v36 = vpop.f32.mrf.mxu0  ;;  %4028 = vmatprep.subr.bf16.mxu1 %v4131_v16 }
 0x953   :  { %v2380_v32 = vmax.f32 %v2343_v36, 0.0  ;;  %v4996_v45 = vpack.c.bf16 %v2343_v36, %v2340_v12  ;;  %v2392_v9 = vpack.c.bf16 %v2382_v19, %v2381_v39 }
 0x954   :  { %v3972_v51 = vpop.f32.mrf.mxu0 }
 0x955   :  { %v2391_v35 = vpack.c.bf16 %v2380_v32, %v2379_v21  ;;  %4029 = vmatpush3.bf16.msra.mxu1 %v4131_v16  ;;  %v2385_v10 = vmax.f32 %v3972_v51, 0.0 }
 0x956   :  { %v4998_v38 = vpop.f32.mrf.mxu0  ;;  %4070 = vmatprep.subr.bf16.mxu1 %v5003_v57 }
 0x957   :  { %3990 = vmatprep.mubr.msk.bf16.mxu1 %vm274_vm2, %v2391_v35  ;;  %v2383_v1 = vmax.f32 %v4998_v38, 0.0 }
 0x958   :  { %v3973_v62 = vpop.f32.mrf.mxu0  ;;  %3991 = vmatmul.mubr.msk.bf16.gmra.mxu1 %vm274_vm2, %v2392_v9 }
 0x959   :  { %v5008_v37 = vpack.c.bf16 %v3973_v62, %v3972_v51  ;;  %v2386_v63 = vmax.f32 %v3973_v62, 0.0 }
 0x95a   :  { %v5010_v2 = vpop.f32.mrf.mxu0 }
 0x95b   :  { %v2384_v29 = vmax.f32 %v5010_v2, 0.0  ;;  %v2394_v42 = vpack.c.bf16 %v2386_v63, %v2385_v10  ;;  %v4133_v63 = vld [vmem:[%s5321_s5 + $0x10] sm:$0xff]  }
 0x95d   :  { %v2393_v17 = vpack.c.bf16 %v2384_v29, %v2383_v1 }
 0x95f   :  { %3994 = vmatprep.mubr.msk.bf16.mxu1 %vm274_vm2, %v2393_v17 }
 0x960   :  { %3995 = vmatmul.mubr.msk.bf16.gmra.mxu1 %vm274_vm2, %v2394_v42 }
 0x9e8   :  { %v3942_v3 = vpop.f32.mrf.mxu1 }
 0x9e9   :  { %v2154_v18 = vadd.f32 %v3942_v3, %v4781_v24 }
 0x9ea   :  { %v2145_v20 = vpop.f32.mrf.mxu1 }
 0x9eb   :  { %3379 = vst.msk [vmem:[%s5323_s7 + $0x90] sm:$0xff] %vm1192_vm3, %v2154_v18  ;;  %v2146_v7 = vadd.f32 %v2145_v20, %v4776_v13  ;;  %v4134_v20 = vld [vmem:[%s5321_s5 + $0x8] sm:$0xff]  }
 0x9ec   :  { %v3943_v26 = vpop.f32.mrf.mxu1 }
 0x9ed   :  { %3377 = vst.msk [vmem:[%s5323_s7 + $0x80] sm:$0xff] %vm1192_vm3, %v2146_v7  ;;  %v2157_v56 = vadd.f32 %v3943_v26, %v4789_v44 }
 0x9ee   :  { %v2148_v60 = vpop.f32.mrf.mxu1 }
 0x9ef   :  { %3380 = vst.msk [vmem:[%s5323_s7 + $0x98] sm:$0xff] %vm1192_vm3, %v2157_v56  ;;  %v2149_v24 = vadd.f32 %v2148_v60, %v4783_v4  ;;  %v4135_v56 = vld [vmem:[%s5321_s5] sm:$0xff]  }
 0x9f0   :  { %v3946_v33 = vpop.f32.mrf.mxu1 }
 0x9f1   :  { %3378 = vst.msk [vmem:[%s5323_s7 + $0x88] sm:$0xff] %vm1192_vm3, %v2149_v24  ;;  %v2170_v13 = vadd.f32 %v3946_v33, %v4798_v31 }
 0x9f2   :  { %v2161_v47 = vpop.f32.mrf.mxu1 }
 0x9f3   :  { %3383 = vst.msk [vmem:[%s5323_s7 + $0xb0] sm:$0xff] %vm1192_vm3, %v2170_v13  ;;  %v2162_v44 = vadd.f32 %v2161_v47, %v4791_v15 }
 0x9f4   :  { %v3947_v50 = vpop.f32.mrf.mxu1 }
 0x9f5   :  { %3381 = vst.msk [vmem:[%s5323_s7 + $0xa0] sm:$0xff] %vm1192_vm3, %v2162_v44  ;;  %v2173_v4 = vadd.f32 %v3947_v50, %v4807_v5 }
 0x9f6   :  { %v2164_v58 = vpop.f32.mrf.mxu1 }
 0x9f7   :  { %3384 = vst.msk [vmem:[%s5323_s7 + $0xb8] sm:$0xff] %vm1192_vm3, %v2173_v4  ;;  %v2165_v31 = vadd.f32 %v2164_v58, %v4800_v14 }
 0x9f8   :  { %v3950_v30 = vpop.f32.mrf.mxu1 }
 0x9f9   :  { %3382 = vst.msk [vmem:[%s5323_s7 + $0xa8] sm:$0xff] %vm1192_vm3, %v2165_v31  ;;  %v2186_v15 = vadd.f32 %v3950_v30, %v4816_v22 }
 0x9fa   :  { %v2177_v27 = vpop.f32.mrf.mxu1 }
 0x9fb   :  { %3387 = vst.msk [vmem:[%s5323_s7 + $0xd0] sm:$0xff] %vm1192_vm3, %v2186_v15  ;;  %v2178_v5 = vadd.f32 %v2177_v27, %v4809_v48 }
 0x9fc   :  { %v3951_v54 = vpop.f32.mrf.mxu1 }
 0x9fd   :  { %3385 = vst.msk [vmem:[%s5323_s7 + $0xc0] sm:$0xff] %vm1192_vm3, %v2178_v5  ;;  %v2189_v14 = vadd.f32 %v3951_v54, %v4827_v59 }
 0x9fe   :  { %v2180_v49 = vpop.f32.mrf.mxu1 }
 0x9ff   :  { %3388 = vst.msk [vmem:[%s5323_s7 + $0xd8] sm:$0xff] %vm1192_vm3, %v2189_v14  ;;  %v2181_v22 = vadd.f32 %v2180_v49, %v4818_v40 }
 0xa00   :  { %v3954_v11 = vpop.f32.mrf.mxu1 }
 0xa01   :  { %3386 = vst.msk [vmem:[%s5323_s7 + $0xc8] sm:$0xff] %vm1192_vm3, %v2181_v22  ;;  %v2202_v48 = vadd.f32 %v3954_v11, %v4834_v23 }
 0xa02   :  { %v2193_v55 = vpop.f32.mrf.mxu1 }
 0xa03   :  { %3391 = vst.msk [vmem:[%s5323_s7 + $0xf0] sm:$0xff] %vm1192_vm3, %v2202_v48  ;;  %v2194_v59 = vadd.f32 %v2193_v55, %v4829_v6 }
 0xa04   :  { %v3955_v53 = vpop.f32.mrf.mxu1 }
 0xa05   :  { %3389 = vst.msk [vmem:[%s5323_s7 + $0xe0] sm:$0xff] %vm1192_vm3, %v2194_v59  ;;  %v2205_v40 = vadd.f32 %v3955_v53, %v4843_v25 }
 0xa06   :  { %v2196_v12 = vpop.f32.mrf.mxu1 }
 0xa07   :  { %3392 = vst.msk [vmem:[%s5323_s7 + $0xf8] sm:$0xff] %vm1192_vm3, %v2205_v40  ;;  %v2197_v23 = vadd.f32 %v2196_v12, %v4836_v43 }
 0xa08   :  { %v3984_v52 = vpop.f32.mrf.mxu1 }
 0xa09   :  { %3390 = vst.msk [vmem:[%s5323_s7 + $0xe8] sm:$0xff] %vm1192_vm3, %v2197_v23  ;;  %v2526_v21 = vmax.f32 %v3984_v52, 0.0 }
 0xa0a   :  { %v2461_v6 = vpop.f32.mrf.mxu1 }
 0xa0b   :  { %v2524_v16 = vmax.f32 %v2461_v6, 0.0 }
 0xa0c   :  { %v3985_v0 = vpop.f32.mrf.mxu1 }
 0xa0d   :  { %v2527_v19 = vmax.f32 %v3985_v0, 0.0 }
 0xa0e   :  { %v2464_v36 = vpop.f32.mrf.mxu1 }
 0xa0f   :  { %v2525_v25 = vmax.f32 %v2464_v36, 0.0  ;;  %v2541_v51 = vpack.c.bf16 %v2527_v19, %v2526_v21 }
 0xa10   :  { %v3988_v32 = vpop.f32.mrf.mxu1 }
 0xa11   :  { %v2540_v39 = vpack.c.bf16 %v2525_v25, %v2524_v16  ;;  %v2530_v10 = vmax.f32 %v3988_v32, 0.0  ;;  %v2669_v25 = vunpack.c.l.bf16 %v4975_v28  ;;  %v2670_v32 = vunpack.c.h.bf16 %v4975_v28 }
 0xa12   :  { %v2477_v35 = vpop.f32.mrf.mxu1 }
 0xa13   :  { %4006 = vmatprep.mubr.msk.bf16.mxu0 %vm274_vm2, %v2540_v39  ;;  %v2528_v1 = vmax.f32 %v2477_v35, 0.0  ;;  %v2671_v35 = vunpack.c.l.bf16 %v4973_v8 }
 0xa14   :  { %v3989_v43 = vpop.f32.mrf.mxu1  ;;  %4007 = vmatmul.mubr.msk.bf16.vlgmr.msra.gmra.mxu0 %vm274_vm2, %v2541_v51 }
 0xa15   :  { %4047 = vmatpush3.bf16.msra.mxu0 %v4940_v41  ;;  %v2531_v9 = vmax.f32 %v3989_v43, 0.0 }
 0xa16   :  { %v2480_v62 = vpop.f32.mrf.mxu1  ;;  %4048 = vmatprep.subr.bf16.mxu0 %v4133_v63 }
 0xa17   :  { %v2529_v29 = vmax.f32 %v2480_v62, 0.0  ;;  %v2543_v3 = vpack.c.bf16 %v2531_v9, %v2530_v10 }
 0xa18   :  { %v3992_v17 = vpop.f32.mrf.mxu1 }
 0xa19   :  { %v2542_v42 = vpack.c.bf16 %v2529_v29, %v2528_v1  ;;  %4049 = vmatpush3.bf16.msra.mxu0 %v4133_v63  ;;  %v2534_v33 = vmax.f32 %v3992_v17, 0.0  ;;  %v2672_v1 = vunpack.c.h.bf16 %v4973_v8  ;;  %v2673_v17 = vunpack.c.l.bf16 %v4984_v61 }
 0xa1a   :  { %v2493_v18 = vpop.f32.mrf.mxu1  ;;  %4050 = vmatprep.subr.bf16.mxu0 %v4134_v20 }
 0xa1b   :  { %4010 = vmatprep.mubr.msk.bf16.mxu0 %vm274_vm2, %v2542_v42  ;;  %v2532_v60 = vmax.f32 %v2493_v18, 0.0 }
 0xa1c   :  { %v3993_v41 = vpop.f32.mrf.mxu1  ;;  %4011 = vmatmul.mubr.msk.bf16.gmra.mxu0 %vm274_vm2, %v2543_v3 }
 0xa1d   :  { %4051 = vmatpush3.bf16.msra.mxu0 %v4134_v20  ;;  %v2535_v7 = vmax.f32 %v3993_v41, 0.0  ;;  %v2674_v41 = vunpack.c.h.bf16 %v4984_v61 }
 0xa1e   :  { %v2496_v26 = vpop.f32.mrf.mxu1  ;;  %4052 = vmatprep.subr.bf16.mxu0 %v4135_v56 }
 0xa1f   :  { %v2533_v24 = vmax.f32 %v2496_v26, 0.0  ;;  %v2545_v44 = vpack.c.bf16 %v2535_v7, %v2534_v33  ;;  %v2675_v26 = vunpack.c.l.bf16 %v4979_v46 }
 0xa20   :  { %v3996_v13 = vpop.f32.mrf.mxu1 }
 0xa21   :  { %v2544_v47 = vpack.c.bf16 %v2533_v24, %v2532_v60  ;;  %4053 = vmatpush3.bf16.msra.mxu0 %v4135_v56  ;;  %v2538_v27 = vmax.f32 %v3996_v13, 0.0 }
 0xa22   :  { %v2509_v50 = vpop.f32.mrf.mxu1 }
 0xa23   :  { %4014 = vmatprep.mubr.msk.bf16.mxu0 %vm274_vm2, %v2544_v47  ;;  %v2536_v30 = vmax.f32 %v2509_v50, 0.0  ;;  %v2676_v47 = vunpack.c.h.bf16 %v4979_v46 }
 0xa24   :  { %v3997_v4 = vpop.f32.mrf.mxu1  ;;  %4015 = vmatmul.mubr.msk.bf16.gmra.mxu0 %vm274_vm2, %v2545_v44 }
 0xa25   :  { %v2539_v58 = vmax.f32 %v3997_v4, 0.0  ;;  %v2677_v4 = vunpack.c.l.bf16 %v4996_v45 }
 0xa26   :  { %v2512_v31 = vpop.f32.mrf.mxu1 }
 0xa27   :  { %v2537_v15 = vmax.f32 %v2512_v31, 0.0  ;;  %v2547_v54 = vpack.c.bf16 %v2539_v58, %v2538_v27  ;;  %v2678_v27 = vunpack.c.h.bf16 %v4996_v45  ;;  %v2680_v45 = vunpack.c.h.bf16 %v4991_v34 }
 0xa29   :  { %v2546_v5 = vpack.c.bf16 %v2537_v15, %v2536_v30 }
 0xa2b   :  { %4018 = vmatprep.mubr.msk.bf16.mxu0 %vm274_vm2, %v2546_v5 }
 0xa2c   :  { %4019 = vmatmul.mubr.msk.bf16.gmra.mxu0 %vm274_vm2, %v2547_v54  ;;  %v2401_v54 = vpack.c.bf16 %v5010_v2, %v4998_v38 }
 0xa2e   :  { %v2681_v38 = vunpack.c.l.bf16 %v2401_v54 }
 0xad4   :  { %v4008_v14 = vpop.f32.mrf.mxu0 }
 0xad6   :  { %v2606_v49 = vpop.f32.mrf.mxu0 }
 0xad7   :  { %2701 = vrot.lane.b32.xlu0 %v2606_v49, %s4139_s28 }
 0xad8   :  { %v4009_v22 = vpop.f32.mrf.mxu0 }
 0xada   :  { %v2609_v11 = vpop.f32.mrf.mxu0 }
 0xadb   :  { %2705 = vrot.lane.b32.xlu0 %v4008_v14, %s4139_s28  ;;  %2703 = vrot.lane.b32.xlu1 %v2609_v11, %s4139_s28  ;;  %v2679_v14 = vunpack.c.l.bf16 %v4991_v34  ;;  %v2683_v34 = vunpack.c.l.bf16 %v5008_v37 }
 0xadc   :  { %v4012_v48 = vpop.f32.mrf.mxu0 }
 0xade   :  { %v2622_v55 = vpop.f32.mrf.mxu0 }
 0xadf   :  { %2707 = vrot.lane.b32.xlu1 %v4009_v22, %s4139_s28  ;;  %2709 = vrot.lane.b32.xlu0 %v2622_v55, %s4139_s28 }
 0xae0   :  { %v4013_v59 = vpop.f32.mrf.mxu0 }
 0xae2   :  { %v2625_v53 = vpop.f32.mrf.mxu0 }
 0xae3   :  { %2713 = vrot.lane.b32.xlu0 %v4012_v48, %s4139_s28  ;;  %2711 = vrot.lane.b32.xlu1 %v2625_v53, %s4139_s28 }
 0xae4   :  { %v4016_v40 = vpop.f32.mrf.mxu0 }
 0xae6   :  { %v2638_v12 = vpop.f32.mrf.mxu0 }
 0xae7   :  { %2715 = vrot.lane.b32.xlu1 %v4013_v59, %s4139_s28  ;;  %2717 = vrot.lane.b32.xlu0 %v2638_v12, %s4139_s28 }
 0xae8   :  { %v4017_v23 = vpop.f32.mrf.mxu0 }
 0xaea   :  { %v2641_v52 = vpop.f32.mrf.mxu0 }
 0xaeb   :  { %2721 = vrot.lane.b32.xlu0 %v4016_v40, %s4139_s28  ;;  %2719 = vrot.lane.b32.xlu1 %v2641_v52, %s4139_s28 }
 0xaec   :  { %v4020_v6 = vpop.f32.mrf.mxu0 }
 0xaee   :  { %v2654_v0 = vpop.f32.mrf.mxu0 }
 0xaef   :  { %2723 = vrot.lane.b32.xlu1 %v4017_v23, %s4139_s28  ;;  %2725 = vrot.lane.b32.xlu0 %v2654_v0, %s4139_s28 }
 0xaf0   :  { %v4021_v19 = vpop.f32.mrf.mxu0 }
 0xaf2   :  { %v2657_v36 = vpop.f32.mrf.mxu0 }
 0xaf3   :  { %2729 = vrot.lane.b32.xlu0 %v4020_v6, %s4139_s28  ;;  %2727 = vrot.lane.b32.xlu1 %v2657_v36, %s4139_s28  ;;  %v2682_v6 = vunpack.c.h.bf16 %v2401_v54 }
 0xaf7   :  { %2731 = vrot.lane.b32.xlu1 %v4021_v19, %s4139_s28 }
 0xb49   :  { %v5130_v16 = vpop.permute.xlu0 %2701 }
 0xb4a   :  { %v2749_v21 = vadd.f32 %v5130_v16, %v2669_v25 }
 0xb4c   :  { %v2765_v9 = vmax.f32 %v2749_v21, 0.0 }
 0xb4d   :  { %v5135_v39 = vpop.permute.xlu0 %2705  ;;  %v5137_v51 = vpop.permute.xlu1 %2703 }
 0xb4e   :  { %v2750_v43 = vadd.f32 %v5137_v51, %v2670_v32  ;;  %v2751_v62 = vadd.f32 %v5135_v39, %v2671_v35 }
 0xb50   :  { %v2766_v63 = vmax.f32 %v2750_v43, 0.0  ;;  %v2767_v3 = vmax.f32 %v2751_v62, 0.0  ;;  %v2684_v43 = vunpack.c.h.bf16 %v5008_v37  ;;  %v4136_v37 = vld [vmem:[%s5322_s6 + $0x10] sm:$0xff]  }
 0xb51   :  { %v5143_v29 = vpop.permute.xlu1 %2707  ;;  %v5145_v10 = vpop.permute.xlu0 %2709 }
 0xb52   :  { %v2752_v28 = vadd.f32 %v5143_v29, %v2672_v1  ;;  %v2781_v42 = vpack.c.bf16 %v2766_v63, %v2765_v9  ;;  %v2753_v20 = vadd.f32 %v5145_v10, %v2673_v17 }
 0xb54   :  { %v2768_v18 = vmax.f32 %v2752_v28, 0.0  ;;  %2797 = vrot.lane.b32.xlu0 %v2781_v42, %s4139_s28  ;;  %v2769_v24 = vmax.f32 %v2753_v20, 0.0  ;;  %v4137_v20 = vld [vmem:[%s5322_s6 + $0x8] sm:$0xff]  }
 0xb55   :  { %v5152_v7 = vpop.permute.xlu0 %2713  ;;  %v5154_v8 = vpop.permute.xlu1 %2711 }
 0xb56   :  { %v2754_v56 = vadd.f32 %v5154_v8, %v2674_v41  ;;  %v2782_v60 = vpack.c.bf16 %v2768_v18, %v2767_v3  ;;  %v2755_v33 = vadd.f32 %v5152_v7, %v2675_v26 }
 0xb58   :  { %v2770_v13 = vmax.f32 %v2754_v56, 0.0  ;;  %2799 = vrot.lane.b32.xlu1 %v2782_v60, %s4139_s28  ;;  %v2771_v31 = vmax.f32 %v2755_v33, 0.0 }
 0xb59   :  { %v5161_v44 = vpop.permute.xlu1 %2715  ;;  %v5163_v61 = vpop.permute.xlu0 %2717 }
 0xb5a   :  { %v2756_v50 = vadd.f32 %v5161_v44, %v2676_v47  ;;  %v2783_v58 = vpack.c.bf16 %v2770_v13, %v2769_v24  ;;  %v2757_v15 = vadd.f32 %v5163_v61, %v2677_v4 }
 0xb5c   :  { %v2772_v30 = vmax.f32 %v2756_v50, 0.0  ;;  %2801 = vrot.lane.b32.xlu0 %v2783_v58, %s4139_s28  ;;  %v2773_v11 = vmax.f32 %v2757_v15, 0.0 }
 0xb5d   :  { %v5170_v5 = vpop.permute.xlu0 %2721  ;;  %v5172_v46 = vpop.permute.xlu1 %2719 }
 0xb5e   :  { %v2758_v49 = vadd.f32 %v5172_v46, %v2678_v27  ;;  %v2784_v22 = vpack.c.bf16 %v2772_v30, %v2771_v31  ;;  %v2759_v48 = vadd.f32 %v5170_v5, %v2679_v14 }
 0xb60   :  { %v2774_v55 = vmax.f32 %v2758_v49, 0.0  ;;  %2803 = vrot.lane.b32.xlu1 %v2784_v22, %s4139_s28  ;;  %v2775_v12 = vmax.f32 %v2759_v48, 0.0 }
 0xb61   :  { %v5181_v59 = vpop.permute.xlu1 %2723  ;;  %v5183_v53 = vpop.permute.xlu0 %2725 }
 0xb62   :  { %v2760_v40 = vadd.f32 %v5181_v59, %v2680_v45  ;;  %v2785_v2 = vpack.c.bf16 %v2774_v55, %v2773_v11  ;;  %v2761_v52 = vadd.f32 %v5183_v53, %v2681_v38 }
 0xb64   :  { %v2776_v23 = vmax.f32 %v2760_v40, 0.0  ;;  %2805 = vrot.lane.b32.xlu0 %v2785_v2, %s4139_s28  ;;  %v2777_v21 = vmax.f32 %v2761_v52, 0.0 }
 0xb65   :  { %v5188_v0 = vpop.permute.xlu0 %2729  ;;  %v5190_v19 = vpop.permute.xlu1 %2727 }
 0xb66   :  { %v2762_v36 = vadd.f32 %v5190_v19, %v2682_v6  ;;  %v2786_v25 = vpack.c.bf16 %v2776_v23, %v2775_v12  ;;  %v2763_v32 = vadd.f32 %v5188_v0, %v2683_v34 }
 0xb68   :  { %v2778_v35 = vmax.f32 %v2762_v36, 0.0  ;;  %2807 = vrot.lane.b32.xlu1 %v2786_v25, %s4139_s28  ;;  %v2779_v1 = vmax.f32 %v2763_v32, 0.0 }
 0xb69   :  { %v5197_v9 = vpop.permute.xlu1 %2731 }
 0xb6a   :  { %v2764_v62 = vadd.f32 %v5197_v9, %v2684_v43  ;;  %v2787_v63 = vpack.c.bf16 %v2778_v35, %v2777_v21 }
 0xb6c   :  { %v2780_v28 = vmax.f32 %v2764_v62, 0.0  ;;  %2809 = vrot.lane.b32.xlu0 %v2787_v63, %s4139_s28 }
 0xb6e   :  { %v2788_v17 = vpack.c.bf16 %v2780_v28, %v2779_v1 }
 0xb70   :  { %2811 = vrot.lane.b32.xlu1 %v2788_v17, %s4139_s28 }
 0xbc6   :  { %v2798_v42 = vpop.permute.xlu0 %2797 }
 0xbc7   :  { %4030 = vmatprep.mubr.msk.bf16.mxu1 %vm274_vm2, %v2798_v42 }
 0xbca   :  { %v2800_v3 = vpop.permute.xlu1 %2799 }
 0xbcb   :  { %4031 = vmatmul.mubr.msk.bf16.vlgmr.msra.gmra.mxu1 %vm274_vm2, %v2800_v3 }
 0xbcc   :  { %4071 = vmatpush3.bf16.msra.mxu1 %v5003_v57  ;;  %v4138_v57 = vld [vmem:[%s5322_s6] sm:$0xff]  }
 0xbcd   :  { %4072 = vmatprep.subr.bf16.mxu1 %v4136_v37 }
 0xbce   :  { %v2802_v18 = vpop.permute.xlu0 %2801 }
 0xbcf   :  { %4034 = vmatprep.mubr.msk.bf16.mxu1 %vm274_vm2, %v2802_v18 }
 0xbd0   :  { %4073 = vmatpush3.bf16.msra.mxu1 %v4136_v37 }
 0xbd1   :  { %4074 = vmatprep.subr.bf16.mxu1 %v4137_v20 }
 0xbd2   :  { %v2804_v41 = vpop.permute.xlu1 %2803 }
 0xbd3   :  { %4035 = vmatmul.mubr.msk.bf16.gmra.mxu1 %vm274_vm2, %v2804_v41 }
 0xbd4   :  { %4075 = vmatpush3.bf16.msra.mxu1 %v4137_v20 }
 0xbd5   :  { %4076 = vmatprep.subr.bf16.mxu1 %v4138_v57 }
 0xbd6   :  { %v2806_v26 = vpop.permute.xlu0 %2805 }
 0xbd7   :  { %4038 = vmatprep.mubr.msk.bf16.mxu1 %vm274_vm2, %v2806_v26 }
 0xbd8   :  { %4077 = vmatpush3.bf16.msra.mxu1 %v4138_v57 }
 0xbda   :  { %v2808_v56 = vpop.permute.xlu1 %2807 }
 0xbdb   :  { %4039 = vmatmul.mubr.msk.bf16.gmra.mxu1 %vm274_vm2, %v2808_v56 }
 0xbde   :  { %v2810_v60 = vpop.permute.xlu0 %2809 }
 0xbdf   :  { %4042 = vmatprep.mubr.msk.bf16.mxu1 %vm274_vm2, %v2810_v60 }
 0xbe2   :  { %v2812_v24 = vpop.permute.xlu1 %2811 }
 0xbe3   :  { %4043 = vmatmul.mubr.msk.bf16.gmra.mxu1 %vm274_vm2, %v2812_v24 }
 0xc8b   :  { %v4032_v33 = vpop.f32.mrf.mxu1 }
 0xc8c   :  { %v2936_v30 = vmax.f32 %v4032_v33, 0.0 }
 0xc8d   :  { %v2871_v13 = vpop.f32.mrf.mxu1 }
 0xc8e   :  { %v2934_v58 = vmax.f32 %v2871_v13, 0.0 }
 0xc8f   :  { %v4033_v47 = vpop.f32.mrf.mxu1 }
 0xc90   :  { %v2937_v50 = vmax.f32 %v4033_v47, 0.0 }
 0xc91   :  { %v2874_v4 = vpop.f32.mrf.mxu1 }
 0xc92   :  { %v2935_v31 = vmax.f32 %v2874_v4, 0.0  ;;  %v2951_v54 = vpack.c.bf16 %v2937_v50, %v2936_v30 }
 0xc93   :  { %v4036_v15 = vpop.f32.mrf.mxu1 }
 0xc94   :  { %v2950_v27 = vpack.c.bf16 %v2935_v31, %v2934_v58  ;;  %v2940_v45 = vmax.f32 %v4036_v15, 0.0 }
 0xc95   :  { %v2887_v14 = vpop.f32.mrf.mxu1 }
 0xc96   :  { %4054 = vmatprep.mubr.msk.bf16.mxu0 %vm274_vm2, %v2950_v27  ;;  %v2938_v48 = vmax.f32 %v2887_v14, 0.0 }
 0xc97   :  { %v4037_v49 = vpop.f32.mrf.mxu1  ;;  %4055 = vmatmul.mubr.msk.bf16.vlgmr.msra.gmra.mxu0 %vm274_vm2, %v2951_v54 }
 0xc98   :  { %v2941_v22 = vmax.f32 %v4037_v49, 0.0 }
 0xc99   :  { %v2890_v11 = vpop.f32.mrf.mxu1 }
 0xc9a   :  { %v2939_v55 = vmax.f32 %v2890_v11, 0.0  ;;  %v2953_v2 = vpack.c.bf16 %v2941_v22, %v2940_v45 }
 0xc9b   :  { %v4040_v40 = vpop.f32.mrf.mxu1 }
 0xc9c   :  { %v2952_v38 = vpack.c.bf16 %v2939_v55, %v2938_v48  ;;  %v2944_v25 = vmax.f32 %v4040_v40, 0.0 }
 0xc9d   :  { %v2903_v12 = vpop.f32.mrf.mxu1 }
 0xc9e   :  { %4058 = vmatprep.mubr.msk.bf16.mxu0 %vm274_vm2, %v2952_v38  ;;  %v2942_v34 = vmax.f32 %v2903_v12, 0.0 }
 0xc9f   :  { %v4041_v23 = vpop.f32.mrf.mxu1  ;;  %4059 = vmatmul.mubr.msk.bf16.gmra.mxu0 %vm274_vm2, %v2953_v2 }
 0xca0   :  { %v2945_v52 = vmax.f32 %v4041_v23, 0.0 }
 0xca1   :  { %v2906_v6 = vpop.f32.mrf.mxu1 }
 0xca2   :  { %v2943_v36 = vmax.f32 %v2906_v6, 0.0  ;;  %v2955_v35 = vpack.c.bf16 %v2945_v52, %v2944_v25 }
 0xca3   :  { %v4044_v21 = vpop.f32.mrf.mxu1 }
 0xca4   :  { %v2954_v32 = vpack.c.bf16 %v2943_v36, %v2942_v34  ;;  %v2948_v42 = vmax.f32 %v4044_v21, 0.0 }
 0xca5   :  { %v2919_v43 = vpop.f32.mrf.mxu1 }
 0xca6   :  { %4062 = vmatprep.mubr.msk.bf16.mxu0 %vm274_vm2, %v2954_v32  ;;  %v2946_v28 = vmax.f32 %v2919_v43, 0.0 }
 0xca7   :  { %v4045_v62 = vpop.f32.mrf.mxu1  ;;  %4063 = vmatmul.mubr.msk.bf16.gmra.mxu0 %vm274_vm2, %v2955_v35 }
 0xca8   :  { %v2949_v63 = vmax.f32 %v4045_v62, 0.0 }
 0xca9   :  { %v2922_v1 = vpop.f32.mrf.mxu1 }
 0xcaa   :  { %v2947_v17 = vmax.f32 %v2922_v1, 0.0  ;;  %v2957_v37 = vpack.c.bf16 %v2949_v63, %v2948_v42 }
 0xcac   :  { %v2956_v3 = vpack.c.bf16 %v2947_v17, %v2946_v28 }
 0xcae   :  { %4066 = vmatprep.mubr.msk.bf16.mxu0 %vm274_vm2, %v2956_v3 }
 0xcaf   :  { %4067 = vmatmul.mubr.msk.bf16.gmra.mxu0 %vm274_vm2, %v2957_v37 }
 0xd57   :  { %v4056_v18 = vpop.f32.mrf.mxu0 }
 0xd58   :  { %v3081_v24 = vmax.f32 %v4056_v18, 0.0 }
 0xd59   :  { %v3016_v20 = vpop.f32.mrf.mxu0 }
 0xd5a   :  { %v3079_v56 = vmax.f32 %v3016_v20, 0.0 }
 0xd5b   :  { %v4057_v41 = vpop.f32.mrf.mxu0 }
 0xd5c   :  { %v3082_v57 = vmax.f32 %v4057_v41, 0.0 }
 0xd5d   :  { %v3019_v26 = vpop.f32.mrf.mxu0 }
 0xd5e   :  { %v3080_v60 = vmax.f32 %v3019_v26, 0.0  ;;  %v3096_v47 = vpack.c.bf16 %v3082_v57, %v3081_v24 }
 0xd5f   :  { %v4060_v33 = vpop.f32.mrf.mxu0 }
 0xd60   :  { %v3095_v13 = vpack.c.bf16 %v3080_v60, %v3079_v56  ;;  %v3085_v27 = vmax.f32 %v4060_v33, 0.0 }
 0xd61   :  { %v3032_v50 = vpop.f32.mrf.mxu0 }
 0xd62   :  { %4078 = vmatprep.mubr.msk.bf16.mxu1 %vm274_vm2, %v3095_v13  ;;  %v3083_v30 = vmax.f32 %v3032_v50, 0.0 }
 0xd63   :  { %v4061_v4 = vpop.f32.mrf.mxu0  ;;  %4079 = vmatmul.mubr.msk.bf16.vlgmr.msra.gmra.mxu1 %vm274_vm2, %v3096_v47 }
 0xd64   :  { %v3086_v58 = vmax.f32 %v4061_v4, 0.0 }
 0xd65   :  { %v3035_v31 = vpop.f32.mrf.mxu0 }
 0xd66   :  { %v3084_v15 = vmax.f32 %v3035_v31, 0.0  ;;  %v3098_v49 = vpack.c.bf16 %v3086_v58, %v3085_v27 }
 0xd67   :  { %v4064_v54 = vpop.f32.mrf.mxu0 }
 0xd68   :  { %v3097_v14 = vpack.c.bf16 %v3084_v15, %v3083_v30  ;;  %v3089_v38 = vmax.f32 %v4064_v54, 0.0 }
 0xd69   :  { %v3048_v22 = vpop.f32.mrf.mxu0 }
 0xd6a   :  { %4082 = vmatprep.mubr.msk.bf16.mxu1 %vm274_vm2, %v3097_v14  ;;  %v3087_v45 = vmax.f32 %v3048_v22, 0.0 }
 0xd6b   :  { %v4065_v11 = vpop.f32.mrf.mxu0  ;;  %4083 = vmatmul.mubr.msk.bf16.gmra.mxu1 %vm274_vm2, %v3098_v49 }
 0xd6c   :  { %v3090_v48 = vmax.f32 %v4065_v11, 0.0 }
 0xd6d   :  { %v3051_v55 = vpop.f32.mrf.mxu0 }
 0xd6e   :  { %v3088_v40 = vmax.f32 %v3051_v55, 0.0  ;;  %v3100_v23 = vpack.c.bf16 %v3090_v48, %v3089_v38 }
 0xd6f   :  { %v4068_v2 = vpop.f32.mrf.mxu0 }
 0xd70   :  { %v3099_v12 = vpack.c.bf16 %v3088_v40, %v3087_v45  ;;  %v3093_v32 = vmax.f32 %v4068_v2, 0.0 }
 0xd71   :  { %v3064_v52 = vpop.f32.mrf.mxu0 }
 0xd72   :  { %4086 = vmatprep.mubr.msk.bf16.mxu1 %vm274_vm2, %v3099_v12  ;;  %v3091_v25 = vmax.f32 %v3064_v52, 0.0 }
 0xd73   :  { %v4069_v6 = vpop.f32.mrf.mxu0  ;;  %4087 = vmatmul.mubr.msk.bf16.gmra.mxu1 %vm274_vm2, %v3100_v23 }
 0xd74   :  { %v3094_v34 = vmax.f32 %v4069_v6, 0.0 }
 0xd75   :  { %v3067_v36 = vpop.f32.mrf.mxu0 }
 0xd76   :  { %v3092_v21 = vmax.f32 %v3067_v36, 0.0  ;;  %v3102_v43 = vpack.c.bf16 %v3094_v34, %v3093_v32 }
 0xd78   :  { %v3101_v35 = vpack.c.bf16 %v3092_v21, %v3091_v25 }
 0xd7a   :  { %4090 = vmatprep.mubr.msk.bf16.mxu1 %vm274_vm2, %v3101_v35 }
 0xd7b   :  { %4091 = vmatmul.mubr.msk.bf16.gmra.mxu1 %vm274_vm2, %v3102_v43 }
 0xe23   :  { %v4080_v62 = vpop.f32.mrf.mxu1 }
 0xe24   :  { %v3170_v63 = vadd.f32 %v4080_v62, %v5135_v39 }
 0xe25   :  { %v3161_v1 = vpop.f32.mrf.mxu1 }
 0xe26   :  { %3459 = vst.msk [vmem:[%s5323_s7 + $0x110] sm:$0xff] %vm1192_vm3, %v3170_v63  ;;  %v3162_v28 = vadd.f32 %v3161_v1, %v5130_v16 }
 0xe27   :  { %v4081_v17 = vpop.f32.mrf.mxu1 }
 0xe28   :  { %3457 = vst.msk [vmem:[%s5323_s7 + $0x100] sm:$0xff] %vm1192_vm3, %v3162_v28  ;;  %v3173_v42 = vadd.f32 %v4081_v17, %v5143_v29 }
 0xe29   :  { %v3164_v3 = vpop.f32.mrf.mxu1 }
 0xe2a   :  { %3460 = vst.msk [vmem:[%s5323_s7 + $0x118] sm:$0xff] %vm1192_vm3, %v3173_v42  ;;  %v3165_v39 = vadd.f32 %v3164_v3, %v5137_v51 }
 0xe2b   :  { %v4084_v37 = vpop.f32.mrf.mxu1 }
 0xe2c   :  { %3458 = vst.msk [vmem:[%s5323_s7 + $0x108] sm:$0xff] %vm1192_vm3, %v3165_v39  ;;  %v3186_v16 = vadd.f32 %v4084_v37, %v5152_v7 }
 0xe2d   :  { %v3177_v18 = vpop.f32.mrf.mxu1 }
 0xe2e   :  { %3463 = vst.msk [vmem:[%s5323_s7 + $0x130] sm:$0xff] %vm1192_vm3, %v3186_v16  ;;  %v3178_v29 = vadd.f32 %v3177_v18, %v5145_v10 }
 0xe2f   :  { %v4085_v20 = vpop.f32.mrf.mxu1 }
 0xe30   :  { %3461 = vst.msk [vmem:[%s5323_s7 + $0x120] sm:$0xff] %vm1192_vm3, %v3178_v29  ;;  %v3189_v51 = vadd.f32 %v4085_v20, %v5161_v44 }
 0xe31   :  { %v3180_v41 = vpop.f32.mrf.mxu1 }
 0xe32   :  { %3464 = vst.msk [vmem:[%s5323_s7 + $0x138] sm:$0xff] %vm1192_vm3, %v3189_v51  ;;  %v3181_v7 = vadd.f32 %v3180_v41, %v5154_v8 }
 0xe33   :  { %v4088_v57 = vpop.f32.mrf.mxu1 }
 0xe34   :  { %3462 = vst.msk [vmem:[%s5323_s7 + $0x128] sm:$0xff] %vm1192_vm3, %v3181_v7  ;;  %v3202_v10 = vadd.f32 %v4088_v57, %v5170_v5 }
 0xe35   :  { %v3193_v26 = vpop.f32.mrf.mxu1 }
 0xe36   :  { %3467 = vst.msk [vmem:[%s5323_s7 + $0x150] sm:$0xff] %vm1192_vm3, %v3202_v10  ;;  %v3194_v44 = vadd.f32 %v3193_v26, %v5163_v61 }
 0xe37   :  { %v4089_v56 = vpop.f32.mrf.mxu1 }
 0xe38   :  { %3465 = vst.msk [vmem:[%s5323_s7 + $0x140] sm:$0xff] %vm1192_vm3, %v3194_v44  ;;  %v3205_v8 = vadd.f32 %v4089_v56, %v5181_v59 }
 0xe39   :  { %v3196_v60 = vpop.f32.mrf.mxu1 }
 0xe3a   :  { %3468 = vst.msk [vmem:[%s5323_s7 + $0x158] sm:$0xff] %vm1192_vm3, %v3205_v8  ;;  %v3197_v5 = vadd.f32 %v3196_v60, %v5172_v46 }
 0xe3b   :  { %v4092_v24 = vpop.f32.mrf.mxu1 }
 0xe3c   :  { %3466 = vst.msk [vmem:[%s5323_s7 + $0x148] sm:$0xff] %vm1192_vm3, %v3197_v5  ;;  %v3218_v61 = vadd.f32 %v4092_v24, %v5188_v0 }
 0xe3d   :  { %v3209_v33 = vpop.f32.mrf.mxu1 }
 0xe3e   :  { %3471 = vst.msk [vmem:[%s5323_s7 + $0x170] sm:$0xff] %vm1192_vm3, %v3218_v61  ;;  %v3210_v59 = vadd.f32 %v3209_v33, %v5183_v53 }
 0xe3f   :  { %v4093_v13 = vpop.f32.mrf.mxu1 }
 0xe40   :  { %3469 = vst.msk [vmem:[%s5323_s7 + $0x160] sm:$0xff] %vm1192_vm3, %v3210_v59  ;;  %v3221_v46 = vadd.f32 %v4093_v13, %v5197_v9 }
 0xe41   :  { %v3212_v47 = vpop.f32.mrf.mxu1 }
 0xe42   :  { %3472 = vst.msk [vmem:[%s5323_s7 + $0x178] sm:$0xff] %vm1192_vm3, %v3221_v46  ;;  %v3213_v0 = vadd.f32 %v3212_v47, %v5190_v19 }
 0xe44   :  { %3470 = vst.msk [vmem:[%s5323_s7 + $0x168] sm:$0xff] %vm1192_vm3, %v3213_v0 }

</bundles_post_ra>
